<compile_context>
chip_gen: v7x
topology: tpu7x:2x2x1
jax: 0.10.0
libtpu: 0.0.40
codegen_flags: <defaults>
</compile_context>

<pallas_src>
import functools
import math

import numpy as np

import jax
import jax.numpy as jnp
from jax.experimental import pallas as pl
from jax.experimental.pallas import tpu as pltpu


# --------------------------------------------------------------------------
# fused decoder-layer kernel (one grid step == one batch's sq tokens)
# --------------------------------------------------------------------------

def _glm_layer_kernel(x_ref, cos_ref, sin_ref, ln1_ref, ln2_ref,
                      wqkv_ref, bqkv_ref, wdense_ref, wh4h_ref, w4hh_ref,
                      rope_j_ref, o_ref, *, eps, nq, nkv, hd, ffn, scale):
    f32 = jnp.float32
    bf16 = jnp.bfloat16

    x = x_ref[...].astype(f32)                              # [S, H], one batch
    S = x.shape[0]

    # ---- RMSNorm 1 (f32 statistics) ----
    var = jnp.mean(x * x, axis=-1, keepdims=True)
    ln1 = x * jax.lax.rsqrt(var + eps) * ln1_ref[...].astype(f32)

    # ---- fused QKV projection + bias (bf16 MXU, f32 accumulate) ----
    mixed = jnp.dot(ln1.astype(bf16), wqkv_ref[...],
                    preferred_element_type=f32) + bqkv_ref[...].astype(f32)
    q_sz, kv_sz = nq * hd, nkv * hd
    q = mixed[:, :q_sz]
    k = mixed[:, q_sz:q_sz + kv_sz]
    v = mixed[:, q_sz + kv_sz:]

    # ---- RoPE: interleaved-pair rotation written as x*cos + (x @ J)*sin ----
    # cos/sin carry 1.0 / 0.0 on the pass-through lanes, so the non-rotary
    # half of each head passes through unchanged.
    cos = cos_ref[...].astype(f32)                          # [S, hd]
    sin = sin_ref[...].astype(f32)                          # [S, hd]
    J = rope_j_ref[...]                                     # [hd, hd] f32

    def rope(t):
        return t * cos + jnp.dot(t, J, preferred_element_type=f32) * sin

    # ---- GQA causal attention; kv head g serves q heads g*rep..(g+1)*rep-1 ----
    rep = nq // nkv
    row = jax.lax.broadcasted_iota(jnp.int32, (S, S), 0)
    col = jax.lax.broadcasted_iota(jnp.int32, (S, S), 1)
    causal = col <= row

    k_heads, v_heads = [], []
    for g in range(nkv):
        k_heads.append(rope(k[:, g * hd:(g + 1) * hd]).astype(bf16))
        v_heads.append(v[:, g * hd:(g + 1) * hd].astype(bf16))

    attn_out = jnp.zeros_like(x)                            # [S, H]
    for h in range(nq):
        g = h // rep                                        # GQA share (no repeat)
        qh = rope(q[:, h * hd:(h + 1) * hd]).astype(bf16)
        # contract last dims directly: no k transpose
        s = jax.lax.dot_general(qh, k_heads[g], (((1,), (1,)), ((), ())),
                                preferred_element_type=f32) * scale
        s = jnp.where(causal, s, -1e30)                     # finite mask: no NaNs
        m = jnp.max(s, axis=-1, keepdims=True)
        p = jnp.exp(s - m)
        denom = jnp.sum(p, axis=-1, keepdims=True)
        p = p * pl.reciprocal(denom, approx=True)           # EUP slot
        ctx_h = jnp.dot(p.astype(bf16), v_heads[g],
                        preferred_element_type=f32)         # [S, hd]
        # fold this head's slice of the dense projection in directly
        attn_out = attn_out + jnp.dot(
            ctx_h.astype(bf16), wdense_ref[pl.ds(h * hd, hd), :],
            preferred_element_type=f32)

    h1 = x + attn_out                                       # residual 1

    # ---- RMSNorm 2 + SwiGLU MLP + residual 2 ----
    var2 = jnp.mean(h1 * h1, axis=-1, keepdims=True)
    ln2 = h1 * jax.lax.rsqrt(var2 + eps) * ln2_ref[...].astype(f32)
    inter = jnp.dot(ln2.astype(bf16), wh4h_ref[...],
                    preferred_element_type=f32)             # [S, 2*ffn]
    a = inter[:, :ffn]
    b = inter[:, ffn:]
    gated = a * jax.nn.sigmoid(a) * b                       # silu(a) * b
    mlp = jnp.dot(gated.astype(bf16), w4hh_ref[...],
                  preferred_element_type=f32)
    o_ref[...] = (h1 + mlp).astype(o_ref.dtype)


def glm_layer(hidden, cos_full, sin_full, lp, rope_j, cfg, sq):
    T, H = hidden.shape
    b = T // sq
    NQ, NKV, HD, FFN = (cfg['n_q_heads'], cfg['n_kv_heads'],
                        cfg['head_dim'], cfg['ffn'])
    qkv_out = (NQ + 2 * NKV) * HD
    kernel = functools.partial(
        _glm_layer_kernel, eps=cfg['eps'], nq=NQ, nkv=NKV, hd=HD, ffn=FFN,
        scale=1.0 / math.sqrt(HD))
    return pl.pallas_call(
        kernel,
        out_shape=jax.ShapeDtypeStruct((T, H), hidden.dtype),
        grid=(b,),
        in_specs=[
            pl.BlockSpec((sq, H), lambda i: (i, 0)),            # x (one batch)
            pl.BlockSpec((sq, HD), lambda i: (i, 0)),           # cos
            pl.BlockSpec((sq, HD), lambda i: (i, 0)),           # sin
            pl.BlockSpec((1, H), lambda i: (0, 0)),             # ln1 weight
            pl.BlockSpec((1, H), lambda i: (0, 0)),             # ln2 weight
            pl.BlockSpec((H, qkv_out), lambda i: (0, 0)),       # w_qkv (bf16)
            pl.BlockSpec((1, qkv_out), lambda i: (0, 0)),       # b_qkv
            pl.BlockSpec((NQ * HD, H), lambda i: (0, 0)),       # w_dense (bf16)
            pl.BlockSpec((H, 2 * FFN), lambda i: (0, 0)),       # w_h4h (bf16)
            pl.BlockSpec((FFN, H), lambda i: (0, 0)),           # w_4hh (bf16)
            pl.BlockSpec((HD, HD), lambda i: (0, 0)),           # RoPE pair matrix
        ],
        out_specs=pl.BlockSpec((sq, H), lambda i: (i, 0)),
        compiler_params=pltpu.CompilerParams(
            dimension_semantics=("parallel",)),
    )(hidden, cos_full, sin_full, lp['ln1_w'], lp['ln2_w'],
      lp['w_qkv'], lp['b_qkv'], lp['w_dense'], lp['w_h4h'], lp['w_4hh'],
      rope_j)


# --------------------------------------------------------------------------
# final RMSNorm (1/rms per row) + tiled vocab projection
# --------------------------------------------------------------------------

def _inv_rms_kernel(x_ref, o_ref, *, eps):
    x = x_ref[...].astype(jnp.float32)
    var = jnp.mean(x * x, axis=-1, keepdims=True)
    o_ref[...] = jax.lax.rsqrt(var + eps)


def final_inv_rms(x, eps, tm=8):
    T, H = x.shape
    assert T % tm == 0
    return pl.pallas_call(
        functools.partial(_inv_rms_kernel, eps=eps),
        out_shape=jax.ShapeDtypeStruct((T, 1), jnp.float32),
        grid=(T // tm,),
        in_specs=[pl.BlockSpec((tm, H), lambda i: (i, 0))],
        out_specs=pl.BlockSpec((tm, 1), lambda i: (i, 0)),
        compiler_params=pltpu.CompilerParams(
            dimension_semantics=("parallel",)),
    )(x)


def _head_kernel(x_ref, invr_ref, lnw_ref, w_ref, o_ref, acc_ref):
    # tiled (M, N, K) matmul with f32 accumulator; the final RMSNorm is fused
    # by scaling each K-slice of x with the precomputed per-row 1/rms.
    @pl.when(pl.program_id(2) == 0)
    def _():
        acc_ref[...] = jnp.zeros_like(acc_ref)

    xn = (x_ref[...].astype(jnp.float32) * invr_ref[...]
          * lnw_ref[...].astype(jnp.float32))
    acc_ref[...] += jnp.dot(xn.astype(jnp.bfloat16), w_ref[...],
                            preferred_element_type=jnp.float32)

    @pl.when(pl.program_id(2) == pl.num_programs(2) - 1)
    def _():
        o_ref[...] = acc_ref[...].astype(o_ref.dtype)


def lm_head(x, inv_rms, ln_w, w_out, *, tm=8, tn=128, tk=128):
    T, H = x.shape
    V = w_out.shape[1]
    assert T % tm == 0 and V % tn == 0 and H % tk == 0
    return pl.pallas_call(
        _head_kernel,
        out_shape=jax.ShapeDtypeStruct((T, V), jnp.float32),
        grid=(T // tm, V // tn, H // tk),
        in_specs=[pl.BlockSpec((tm, tk), lambda i, j, k: (i, k)),
                  pl.BlockSpec((tm, 1), lambda i, j, k: (i, 0)),
                  pl.BlockSpec((1, tk), lambda i, j, k: (0, k)),
                  pl.BlockSpec((tk, tn), lambda i, j, k: (k, j))],
        out_specs=pl.BlockSpec((tm, tn), lambda i, j, k: (i, j)),
        scratch_shapes=[pltpu.VMEM((tm, tn), jnp.float32)],
        compiler_params=pltpu.CompilerParams(
            dimension_semantics=("parallel", "parallel", "arbitrary")),
    )(x, inv_rms, ln_w, w_out)


# --------------------------------------------------------------------------
# model glue
# --------------------------------------------------------------------------

CFG = dict(
    hidden=128,        # analog of 4096
    n_q_heads=4,       # analog of 32
    n_kv_heads=2,      # analog of 2 (multi-query groups)
    head_dim=32,       # analog of 128
    rot_dim=16,        # analog of 64 (= head_dim / 2)
    ffn=256,           # analog of 13696
    n_layers=2,        # analog of 28
    vocab=256,         # analog of 65024
    max_seq=64,        # analog of 32768 (rotary cache length)
    eps=1e-5,
)


def init_params(key, cfg):
    H, HD = cfg['hidden'], cfg['head_dim']
    NQ, NKV = cfg['n_q_heads'], cfg['n_kv_heads']
    ROT, FFN, V = cfg['rot_dim'], cfg['ffn'], cfg['vocab']
    qkv_out = (NQ + 2 * NKV) * HD

    n_keys = 2 + 5 * cfg['n_layers']
    keys = iter(jax.random.split(key, n_keys))

    def nrm(shape, dtype=jnp.bfloat16, scale=0.02):
        w = scale * jax.random.normal(next(keys), shape, jnp.float32)
        return w.astype(dtype)

    params = dict(
        wte=nrm((V, H), dtype=jnp.float32),
        w_out=nrm((H, V)),                               # bf16 vocab projection
        final_ln_w=jnp.ones((1, H), jnp.float32),
    )

    # rotary cache, same recipe as the module (fp32 here instead of fp16)
    theta = 1.0 / (10000.0 ** (jnp.arange(0, ROT, 2, dtype=jnp.float32) / ROT))
    seq_idx = jnp.arange(cfg['max_seq'], dtype=jnp.float32)
    idx_theta = jnp.outer(seq_idx, theta)
    params['rope_cache'] = jnp.stack(
        [jnp.cos(idx_theta), jnp.sin(idx_theta)], axis=-1)   # [max_seq, ROT//2, 2]

    # constant pair-rotation matrix: (x @ J)[2i] = -x[2i+1], (x @ J)[2i+1] = x[2i]
    J = np.zeros((HD, HD), np.float32)
    for i in range(0, ROT, 2):
        J[i + 1, i] = -1.0
        J[i, i + 1] = 1.0
    params['rope_J'] = jnp.asarray(J)

    layers = []
    for _ in range(cfg['n_layers']):
        layers.append(dict(
            ln1_w=jnp.ones((1, H), jnp.float32),
            ln2_w=jnp.ones((1, H), jnp.float32),
            # TODO(synk): the torch layers are int4 QuantLinear; modeled here
            # as dense bf16 weights of the same (in, out) shapes.
            w_qkv=nrm((H, qkv_out)),
            b_qkv=nrm((1, qkv_out), dtype=jnp.float32),
            w_dense=nrm((NQ * HD, H)),
            w_h4h=nrm((H, 2 * FFN)),
            w_4hh=nrm((FFN, H)),
        ))
    params['layers'] = layers
    return params


def glm_forward(params, input_ids, position_ids, cfg):
    H, HD = cfg['hidden'], cfg['head_dim']
    ROT = cfg['rot_dim']
    b, sq = input_ids.shape
    T = b * sq

    # Batch-major token layout [b*sq, H].  The torch module's seq-first
    # transpose is layout-only: per-token math and per-batch causal attention
    # are identical, and this layout removes every wrapper-side transpose.
    hidden = params['wte'][input_ids].reshape(T, H).astype(jnp.float32)

    # Per-token rotary cos/sin expanded to head_dim lanes: lanes 2i and 2i+1
    # carry cos/sin(pos * theta_i); pass-through lanes carry cos=1 / sin=0.
    rc = params['rope_cache'][position_ids]              # [b, sq, ROT//2, 2]
    cos = jnp.repeat(rc[..., 0], 2, axis=-1)             # [b, sq, ROT]
    sin = jnp.repeat(rc[..., 1], 2, axis=-1)
    cos_full = jnp.concatenate(
        [cos, jnp.ones((b, sq, HD - ROT), jnp.float32)], axis=-1).reshape(T, HD)
    sin_full = jnp.concatenate(
        [sin, jnp.zeros((b, sq, HD - ROT), jnp.float32)], axis=-1).reshape(T, HD)

    for lp in params['layers']:
        hidden = glm_layer(hidden, cos_full, sin_full, lp,
                           params['rope_J'], cfg, sq)

    inv_rms = final_inv_rms(hidden, cfg['eps'])
    logits = lm_head(hidden, inv_rms, params['final_ln_w'], params['w_out'],
                     tm=8, tn=128, tk=H)
    return logits.reshape(b, sq, cfg['vocab'])            # no transpose needed


if __name__ == "__main__":
    key = jax.random.PRNGKey(0)
    pkey, ikey = jax.random.split(key)
    params = init_params(pkey, CFG)

    batch, seq = 2, 8
    input_ids = jax.random.randint(ikey, (batch, seq), 0, CFG['vocab'],
                                   dtype=jnp.int32)
    position_ids = jnp.broadcast_to(jnp.arange(seq, dtype=jnp.int32),
                                    (batch, seq))

    fwd = jax.jit(functools.partial(glm_forward, cfg=CFG))
    logits = fwd(params, input_ids, position_ids)
    logits = jax.block_until_ready(logits)
    assert logits.shape == (batch, seq, CFG['vocab'])
    assert bool(jnp.all(jnp.isfinite(logits)))
    print("KERNEL_OK")
</pallas_src>

<mosaic_0001>
module attributes {stable_mosaic.version = 11 : i64} {
  func.func @_inv_rms_kernel(%arg0: i32, %arg1: memref<8x128xf32, #tpu.memory_space<vmem>>, %arg2: memref<8x1xf32, #tpu.memory_space<vmem>>) attributes {dimension_semantics = [#tpu.dimension_semantics<parallel>], iteration_bounds = array<i64: 2>, scalar_prefetch = 0 : i64, scratch_operands = 0 : i64, tpu.core_type = #tpu.core_type<tc>, window_params = [{transform_indices = @transform_0, window_bounds = array<i64: 8, 128>}, {transform_indices = @transform_1, window_bounds = array<i64: 8, 1>}]} {
    %c0 = arith.constant 0 : index
    %c0_0 = arith.constant 0 : index
    %0 = vector.load %arg1[%c0, %c0_0] : memref<8x128xf32, #tpu.memory_space<vmem>>, vector<8x128xf32>
    %1 = arith.mulf %0, %0 : vector<8x128xf32>
    %cst = arith.constant dense<0.000000e+00> : vector<8xf32>
    %2 = vector.multi_reduction <add>, %1, %cst [1] : vector<8x128xf32> to vector<8xf32>
    %3 = vector.shape_cast %2 : vector<8xf32> to vector<8x1xf32>
    %cst_1 = arith.constant 1.280000e+02 : f32
    %4 = vector.broadcast %cst_1 : f32 to vector<8x1xf32>
    %5 = arith.divf %3, %4 : vector<8x1xf32>
    %cst_2 = arith.constant 9.99999974E-6 : f32
    %6 = vector.broadcast %cst_2 : f32 to vector<8x1xf32>
    %7 = arith.addf %5, %6 : vector<8x1xf32>
    %8 = math.rsqrt %7 : vector<8x1xf32>
    %c0_3 = arith.constant 0 : index
    %c0_4 = arith.constant 0 : index
    %9 = vector.load %arg2[%c0_3, %c0_4] : memref<8x1xf32, #tpu.memory_space<vmem>>, vector<8x1xf32>
    tpu.vector_store %arg2[%c0_3, %c0_4], %8 {strides = array<i32>} : memref<8x1xf32, #tpu.memory_space<vmem>>, vector<8x1xf32>,
    return
  }
  func.func @transform_0(%arg0: i32) -> (i32, i32) {
    %c0_i32 = arith.constant 0 : i32
    %c0_i32_0 = arith.constant 0 : i32
    return %arg0, %c0_i32 : i32, i32
  }
  func.func @transform_1(%arg0: i32) -> (i32, i32) {
    %c0_i32 = arith.constant 0 : i32
    %c0_i32_0 = arith.constant 0 : i32
    return %arg0, %c0_i32 : i32, i32
  }
}

module attributes {stable_mosaic.version = 11 : i64} {
  func.func @_head_kernel(%arg0: i32, %arg1: i32, %arg2: i32, %arg3: memref<8x128xf32, #tpu.memory_space<vmem>>, %arg4: memref<8x1xf32, #tpu.memory_space<vmem>>, %arg5: memref<1x128xf32, #tpu.memory_space<vmem>>, %arg6: memref<128x128xbf16, #tpu.memory_space<vmem>>, %arg7: memref<8x128xf32, #tpu.memory_space<vmem>>, %arg8: memref<8x128xf32, #tpu.memory_space<vmem>>) attributes {dimension_semantics = [#tpu.dimension_semantics<parallel>, #tpu.dimension_semantics<parallel>, #tpu.dimension_semantics<arbitrary>], iteration_bounds = array<i64: 2, 2, 1>, scalar_prefetch = 0 : i64, scratch_operands = 1 : i64, tpu.core_type = #tpu.core_type<tc>, window_params = [{transform_indices = @transform_0, window_bounds = array<i64: 8, 128>}, {transform_indices = @transform_1, window_bounds = array<i64: 8, 1>}, {transform_indices = @transform_2, window_bounds = array<i64: 1, 128>}, {transform_indices = @transform_3, window_bounds = array<i64: 128, 128>}, {transform_indices = @transform_4, window_bounds = array<i64: 8, 128>}]} {
    %c0_i32 = arith.constant 0 : i32
    %0 = arith.cmpi eq, %arg2, %c0_i32 : i32
    %1 = arith.extui %0 : i1 to i32
    %c0_i32_0 = arith.constant 0 : i32
    %2 = arith.cmpi ne, %1, %c0_i32_0 : i32
    scf.if %2 {
      %cst_14 = arith.constant 0.000000e+00 : f32
      %19 = vector.broadcast %cst_14 : f32 to vector<8x128xf32>
      %c0_15 = arith.constant 0 : index
      %c0_16 = arith.constant 0 : index
      %20 = vector.load %arg8[%c0_15, %c0_16] : memref<8x128xf32, #tpu.memory_space<vmem>>, vector<8x128xf32>
      tpu.vector_store %arg8[%c0_15, %c0_16], %19 {strides = array<i32>} : memref<8x128xf32, #tpu.memory_space<vmem>>, vector<8x128xf32>,
    } else {
    }
    %c0 = arith.constant 0 : index
    %c0_1 = arith.constant 0 : index
    %3 = vector.load %arg3[%c0, %c0_1] : memref<8x128xf32, #tpu.memory_space<vmem>>, vector<8x128xf32>
    %c0_2 = arith.constant 0 : index
    %c0_3 = arith.constant 0 : index
    %4 = vector.load %arg4[%c0_2, %c0_3] : memref<8x1xf32, #tpu.memory_space<vmem>>, vector<8x1xf32>
    %5 = vector.broadcast %4 : vector<8x1xf32> to vector<8x128xf32>
    %6 = arith.mulf %3, %5 : vector<8x128xf32>
    %c0_4 = arith.constant 0 : index
    %c0_5 = arith.constant 0 : index
    %7 = vector.load %arg5[%c0_4, %c0_5] : memref<1x128xf32, #tpu.memory_space<vmem>>, vector<1x128xf32>
    %8 = vector.broadcast %7 : vector<1x128xf32> to vector<8x128xf32>
    %9 = arith.mulf %6, %8 : vector<8x128xf32>
    %c0_6 = arith.constant 0 : index
    %c0_7 = arith.constant 0 : index
    %10 = vector.load %arg8[%c0_6, %c0_7] : memref<8x128xf32, #tpu.memory_space<vmem>>, vector<8x128xf32>
    %11 = arith.truncf %9 : vector<8x128xf32> to vector<8x128xbf16>
    %c0_8 = arith.constant 0 : index
    %c0_9 = arith.constant 0 : index
    %12 = vector.load %arg6[%c0_8, %c0_9] : memref<128x128xbf16, #tpu.memory_space<vmem>>, vector<128x128xbf16>
    %cst = arith.constant dense<0.000000e+00> : vector<8x128xf32>
    %13 = tpu.matmul %11, %12, %cst {dimension_numbers = #tpu.dot_dimension_numbers<[1], [0], [0], [1], [0, 0, 1, 1], [], []>} : vector<8x128xbf16>, vector<128x128xbf16>, vector<8x128xf32> -> vector<8x128xf32>
    %14 = arith.addf %10, %13 : vector<8x128xf32>
    %c0_10 = arith.constant 0 : index
    %c0_11 = arith.constant 0 : index
    %15 = vector.load %arg8[%c0_10, %c0_11] : memref<8x128xf32, #tpu.memory_space<vmem>>, vector<8x128xf32>
    tpu.vector_store %arg8[%c0_10, %c0_11], %14 {strides = array<i32>} : memref<8x128xf32, #tpu.memory_space<vmem>>, vector<8x128xf32>,
    %c0_i32_12 = arith.constant 0 : i32
    %16 = arith.cmpi eq, %arg2, %c0_i32_12 : i32
    %17 = arith.extui %16 : i1 to i32
    %c0_i32_13 = arith.constant 0 : i32
    %18 = arith.cmpi ne, %17, %c0_i32_13 : i32
    scf.if %18 {
      %c0_14 = arith.constant 0 : index
      %c0_15 = arith.constant 0 : index
      %19 = vector.load %arg8[%c0_14, %c0_15] : memref<8x128xf32, #tpu.memory_space<vmem>>, vector<8x128xf32>
      %c0_16 = arith.constant 0 : index
      %c0_17 = arith.constant 0 : index
      %20 = vector.load %arg7[%c0_16, %c0_17] : memref<8x128xf32, #tpu.memory_space<vmem>>, vector<8x128xf32>
      tpu.vector_store %arg7[%c0_16, %c0_17], %19 {strides = array<i32>} : memref<8x128xf32, #tpu.memory_space<vmem>>, vector<8x128xf32>,
    } else {
    }
    return
  }
  func.func @transform_0(%arg0: i32, %arg1: i32, %arg2: i32) -> (i32, i32) {
    %c0_i32 = arith.constant 0 : i32
    return %arg0, %arg2 : i32, i32
  }
  func.func @transform_1(%arg0: i32, %arg1: i32, %arg2: i32) -> (i32, i32) {
    %c0_i32 = arith.constant 0 : i32
    %c0_i32_0 = arith.constant 0 : i32
    return %arg0, %c0_i32 : i32, i32
  }
  func.func @transform_2(%arg0: i32, %arg1: i32, %arg2: i32) -> (i32, i32) {
    %c0_i32 = arith.constant 0 : i32
    %c0_i32_0 = arith.constant 0 : i32
    return %c0_i32, %arg2 : i32, i32
  }
  func.func @transform_3(%arg0: i32, %arg1: i32, %arg2: i32) -> (i32, i32) {
    %c0_i32 = arith.constant 0 : i32
    return %arg2, %arg1 : i32, i32
  }
  func.func @transform_4(%arg0: i32, %arg1: i32, %arg2: i32) -> (i32, i32) {
    %c0_i32 = arith.constant 0 : i32
    return %arg0, %arg1 : i32, i32
  }
}

module attributes {stable_mosaic.version = 11 : i64} {
  func.func @_glm_layer_kernel(%arg0: i32, %arg1: memref<8x128xf32, #tpu.memory_space<vmem>>, %arg2: memref<8x32xf32, #tpu.memory_space<vmem>>, %arg3: memref<8x32xf32, #tpu.memory_space<vmem>>, %arg4: memref<1x128xf32, #tpu.memory_space<vmem>>, %arg5: memref<1x128xf32, #tpu.memory_space<vmem>>, %arg6: memref<128x256xbf16, #tpu.memory_space<vmem>>, %arg7: memref<1x256xf32, #tpu.memory_space<vmem>>, %arg8: memref<128x128xbf16, #tpu.memory_space<vmem>>, %arg9: memref<128x512xbf16, #tpu.memory_space<vmem>>, %arg10: memref<256x128xbf16, #tpu.memory_space<vmem>>, %arg11: memref<32x32xf32, #tpu.memory_space<vmem>>, %arg12: memref<8x128xf32, #tpu.memory_space<vmem>>) attributes {dimension_semantics = [#tpu.dimension_semantics<parallel>], iteration_bounds = array<i64: 2>, scalar_prefetch = 0 : i64, scratch_operands = 0 : i64, tpu.core_type = #tpu.core_type<tc>, window_params = [{transform_indices = @transform_0, window_bounds = array<i64: 8, 128>}, {transform_indices = @transform_1, window_bounds = array<i64: 8, 32>}, {transform_indices = @transform_2, window_bounds = array<i64: 8, 32>}, {pipeline_mode = #tpu.pipeline_mode<synchronous>, transform_indices = @transform_3, window_bounds = array<i64: 1, 128>}, {pipeline_mode = #tpu.pipeline_mode<synchronous>, transform_indices = @transform_4, window_bounds = array<i64: 1, 128>}, {pipeline_mode = #tpu.pipeline_mode<synchronous>, transform_indices = @transform_5, window_bounds = array<i64: 128, 256>}, {pipeline_mode = #tpu.pipeline_mode<synchronous>, transform_indices = @transform_6, window_bounds = array<i64: 1, 256>}, {pipeline_mode = #tpu.pipeline_mode<synchronous>, transform_indices = @transform_7, window_bounds = array<i64: 128, 128>}, {pipeline_mode = #tpu.pipeline_mode<synchronous>, transform_indices = @transform_8, window_bounds = array<i64: 128, 512>}, {pipeline_mode = #tpu.pipeline_mode<synchronous>, transform_indices = @transform_9, window_bounds = array<i64: 256, 128>}, {pipeline_mode = #tpu.pipeline_mode<synchronous>, transform_indices = @transform_10, window_bounds = array<i64: 32, 32>}, {transform_indices = @transform_11, window_bounds = array<i64: 8, 128>}]} {
    %c0 = arith.constant 0 : index
    %c0_0 = arith.constant 0 : index
    %0 = vector.load %arg1[%c0, %c0_0] : memref<8x128xf32, #tpu.memory_space<vmem>>, vector<8x128xf32>
    %1 = arith.mulf %0, %0 : vector<8x128xf32>
    %cst = arith.constant dense<0.000000e+00> : vector<8xf32>
    %2 = vector.multi_reduction <add>, %1, %cst [1] : vector<8x128xf32> to vector<8xf32>
    %3 = vector.shape_cast %2 : vector<8xf32> to vector<8x1xf32>
    %cst_1 = arith.constant 1.280000e+02 : f32
    %4 = vector.broadcast %cst_1 : f32 to vector<8x1xf32>
    %5 = arith.divf %3, %4 : vector<8x1xf32>
    %cst_2 = arith.constant 9.99999974E-6 : f32
    %6 = vector.broadcast %cst_2 : f32 to vector<8x1xf32>
    %7 = arith.addf %5, %6 : vector<8x1xf32>
    %8 = math.rsqrt %7 : vector<8x1xf32>
    %9 = vector.broadcast %8 : vector<8x1xf32> to vector<8x128xf32>
    %10 = arith.mulf %0, %9 : vector<8x128xf32>
    %c0_3 = arith.constant 0 : index
    %c0_4 = arith.constant 0 : index
    %11 = vector.load %arg4[%c0_3, %c0_4] : memref<1x128xf32, #tpu.memory_space<vmem>>, vector<1x128xf32>
    %12 = vector.broadcast %11 : vector<1x128xf32> to vector<8x128xf32>
    %13 = arith.mulf %10, %12 : vector<8x128xf32>
    %14 = arith.truncf %13 : vector<8x128xf32> to vector<8x128xbf16>
    %c0_5 = arith.constant 0 : index
    %c0_6 = arith.constant 0 : index
    %15 = vector.load %arg6[%c0_5, %c0_6] : memref<128x256xbf16, #tpu.memory_space<vmem>>, vector<128x256xbf16>
    %cst_7 = arith.constant dense<0.000000e+00> : vector<8x256xf32>
    %16 = tpu.matmul %14, %15, %cst_7 {dimension_numbers = #tpu.dot_dimension_numbers<[1], [0], [0], [1], [0, 0, 1, 1], [], []>} : vector<8x128xbf16>, vector<128x256xbf16>, vector<8x256xf32> -> vector<8x256xf32>
    %c0_8 = arith.constant 0 : index
    %c0_9 = arith.constant 0 : index
    %17 = vector.load %arg7[%c0_8, %c0_9] : memref<1x256xf32, #tpu.memory_space<vmem>>, vector<1x256xf32>
    %18 = vector.broadcast %17 : vector<1x256xf32> to vector<8x256xf32>
    %19 = arith.addf %16, %18 : vector<8x256xf32>
    %20 = vector.extract_strided_slice %19 {offsets = [0, 0], sizes = [8, 128], strides = [1, 1]} : vector<8x256xf32> to vector<8x128xf32>
    %21 = vector.extract_strided_slice %19 {offsets = [0, 128], sizes = [8, 64], strides = [1, 1]} : vector<8x256xf32> to vector<8x64xf32>
    %22 = vector.extract_strided_slice %19 {offsets = [0, 192], sizes = [8, 64], strides = [1, 1]} : vector<8x256xf32> to vector<8x64xf32>
    %c0_10 = arith.constant 0 : index
    %c0_11 = arith.constant 0 : index
    %23 = vector.load %arg2[%c0_10, %c0_11] : memref<8x32xf32, #tpu.memory_space<vmem>>, vector<8x32xf32>
    %c0_12 = arith.constant 0 : index
    %c0_13 = arith.constant 0 : index
    %24 = vector.load %arg3[%c0_12, %c0_13] : memref<8x32xf32, #tpu.memory_space<vmem>>, vector<8x32xf32>
    %c0_14 = arith.constant 0 : index
    %c0_15 = arith.constant 0 : index
    %25 = vector.load %arg11[%c0_14, %c0_15] : memref<32x32xf32, #tpu.memory_space<vmem>>, vector<32x32xf32>
    %26 = tpu.iota {dimensions = array<i32: 0>} : vector<8x8xi32>
    %27 = tpu.iota {dimensions = array<i32: 1>} : vector<8x8xi32>
    %28 = arith.cmpi sle, %27, %26 : vector<8x8xi32>
    %29 = vector.extract_strided_slice %21 {offsets = [0, 0], sizes = [8, 32], strides = [1, 1]} : vector<8x64xf32> to vector<8x32xf32>
    %30 = arith.mulf %29, %23 : vector<8x32xf32>
    %cst_16 = arith.constant dense<0.000000e+00> : vector<8x32xf32>
    %31 = tpu.matmul %29, %25, %cst_16 {dimension_numbers = #tpu.dot_dimension_numbers<[1], [0], [0], [1], [0, 0, 1, 1], [], []>} : vector<8x32xf32>, vector<32x32xf32>, vector<8x32xf32> -> vector<8x32xf32>
    %32 = arith.mulf %31, %24 : vector<8x32xf32>
    %33 = arith.addf %30, %32 : vector<8x32xf32>
    %34 = arith.truncf %33 : vector<8x32xf32> to vector<8x32xbf16>
    %35 = vector.extract_strided_slice %22 {offsets = [0, 0], sizes = [8, 32], strides = [1, 1]} : vector<8x64xf32> to vector<8x32xf32>
    %36 = arith.truncf %35 : vector<8x32xf32> to vector<8x32xbf16>
    %37 = vector.extract_strided_slice %21 {offsets = [0, 32], sizes = [8, 32], strides = [1, 1]} : vector<8x64xf32> to vector<8x32xf32>
    %38 = arith.mulf %37, %23 : vector<8x32xf32>
    %cst_17 = arith.constant dense<0.000000e+00> : vector<8x32xf32>
    %39 = tpu.matmul %37, %25, %cst_17 {dimension_numbers = #tpu.dot_dimension_numbers<[1], [0], [0], [1], [0, 0, 1, 1], [], []>} : vector<8x32xf32>, vector<32x32xf32>, vector<8x32xf32> -> vector<8x32xf32>
    %40 = arith.mulf %39, %24 : vector<8x32xf32>
    %41 = arith.addf %38, %40 : vector<8x32xf32>
    %42 = arith.truncf %41 : vector<8x32xf32> to vector<8x32xbf16>
    %43 = vector.extract_strided_slice %22 {offsets = [0, 32], sizes = [8, 32], strides = [1, 1]} : vector<8x64xf32> to vector<8x32xf32>
    %44 = arith.truncf %43 : vector<8x32xf32> to vector<8x32xbf16>
    %cst_18 = arith.constant 0.000000e+00 : f32
    %45 = vector.broadcast %cst_18 : f32 to vector<8x128xf32>
    %46 = vector.extract_strided_slice %20 {offsets = [0, 0], sizes = [8, 32], strides = [1, 1]} : vector<8x128xf32> to vector<8x32xf32>
    %47 = arith.mulf %46, %23 : vector<8x32xf32>
    %cst_19 = arith.constant dense<0.000000e+00> : vector<8x32xf32>
    %48 = tpu.matmul %46, %25, %cst_19 {dimension_numbers = #tpu.dot_dimension_numbers<[1], [0], [0], [1], [0, 0, 1, 1], [], []>} : vector<8x32xf32>, vector<32x32xf32>, vector<8x32xf32> -> vector<8x32xf32>
    %49 = arith.mulf %48, %24 : vector<8x32xf32>
    %50 = arith.addf %47, %49 : vector<8x32xf32>
    %51 = arith.truncf %50 : vector<8x32xf32> to vector<8x32xbf16>
    %cst_20 = arith.constant dense<0.000000e+00> : vector<8x8xf32>
    %52 = tpu.matmul %51, %34, %cst_20 {dimension_numbers = #tpu.dot_dimension_numbers<[1], [1], [0], [0], [0, 0, 1, 0], [], []>} : vector<8x32xbf16>, vector<8x32xbf16>, vector<8x8xf32> -> vector<8x8xf32>
    %cst_21 = arith.constant 0.176776692 : f32
    %53 = vector.broadcast %cst_21 : f32 to vector<8x8xf32>
    %54 = arith.mulf %52, %53 : vector<8x8xf32>
    %cst_22 = arith.constant -1.000000e+30 : f32
    %55 = vector.broadcast %cst_22 : f32 to vector<8x8xf32>
    %56 = arith.select %28, %54, %55 : vector<8x8xi1>, vector<8x8xf32>
    %cst_23 = arith.constant dense<0xFF800000> : vector<8xf32>
    %57 = vector.multi_reduction <maximumf>, %56, %cst_23 [1] : vector<8x8xf32> to vector<8xf32>
    %58 = vector.shape_cast %57 : vector<8xf32> to vector<8x1xf32>
    %59 = vector.broadcast %58 : vector<8x1xf32> to vector<8x8xf32>
    %60 = arith.subf %56, %59 : vector<8x8xf32>
    %61 = math.exp %60 : vector<8x8xf32>
    %cst_24 = arith.constant dense<0.000000e+00> : vector<8xf32>
    %62 = vector.multi_reduction <add>, %61, %cst_24 [1] : vector<8x8xf32> to vector<8xf32>
    %63 = vector.shape_cast %62 : vector<8xf32> to vector<8x1xf32>
    %64 = tpu.reciprocal %63 {approx = true} : vector<8x1xf32> -> vector<8x1xf32>
    %65 = vector.broadcast %64 : vector<8x1xf32> to vector<8x8xf32>
    %66 = arith.mulf %61, %65 : vector<8x8xf32>
    %67 = arith.truncf %66 : vector<8x8xf32> to vector<8x8xbf16>
    %cst_25 = arith.constant dense<0.000000e+00> : vector<8x32xf32>
    %68 = tpu.matmul %67, %36, %cst_25 {dimension_numbers = #tpu.dot_dimension_numbers<[1], [0], [0], [1], [0, 0, 1, 1], [], []>} : vector<8x8xbf16>, vector<8x32xbf16>, vector<8x32xf32> -> vector<8x32xf32>
    %69 = arith.truncf %68 : vector<8x32xf32> to vector<8x32xbf16>
    %c0_26 = arith.constant 0 : index
    %c0_27 = arith.constant 0 : index
    %70 = vector.load %arg8[%c0_26, %c0_27] : memref<128x128xbf16, #tpu.memory_space<vmem>>, vector<32x128xbf16>
    %cst_28 = arith.constant dense<0.000000e+00> : vector<8x128xf32>
    %71 = tpu.matmul %69, %70, %cst_28 {dimension_numbers = #tpu.dot_dimension_numbers<[1], [0], [0], [1], [0, 0, 1, 1], [], []>} : vector<8x32xbf16>, vector<32x128xbf16>, vector<8x128xf32> -> vector<8x128xf32>
    %72 = arith.addf %45, %71 : vector<8x128xf32>
    %73 = vector.extract_strided_slice %20 {offsets = [0, 32], sizes = [8, 32], strides = [1, 1]} : vector<8x128xf32> to vector<8x32xf32>
    %74 = arith.mulf %73, %23 : vector<8x32xf32>
    %cst_29 = arith.constant dense<0.000000e+00> : vector<8x32xf32>
    %75 = tpu.matmul %73, %25, %cst_29 {dimension_numbers = #tpu.dot_dimension_numbers<[1], [0], [0], [1], [0, 0, 1, 1], [], []>} : vector<8x32xf32>, vector<32x32xf32>, vector<8x32xf32> -> vector<8x32xf32>
    %76 = arith.mulf %75, %24 : vector<8x32xf32>
    %77 = arith.addf %74, %76 : vector<8x32xf32>
    %78 = arith.truncf %77 : vector<8x32xf32> to vector<8x32xbf16>
    %cst_30 = arith.constant dense<0.000000e+00> : vector<8x8xf32>
    %79 = tpu.matmul %78, %34, %cst_30 {dimension_numbers = #tpu.dot_dimension_numbers<[1], [1], [0], [0], [0, 0, 1, 0], [], []>} : vector<8x32xbf16>, vector<8x32xbf16>, vector<8x8xf32> -> vector<8x8xf32>
    %cst_31 = arith.constant 0.176776692 : f32
    %80 = vector.broadcast %cst_31 : f32 to vector<8x8xf32>
    %81 = arith.mulf %79, %80 : vector<8x8xf32>
    %cst_32 = arith.constant -1.000000e+30 : f32
    %82 = vector.broadcast %cst_32 : f32 to vector<8x8xf32>
    %83 = arith.select %28, %81, %82 : vector<8x8xi1>, vector<8x8xf32>
    %cst_33 = arith.constant dense<0xFF800000> : vector<8xf32>
    %84 = vector.multi_reduction <maximumf>, %83, %cst_33 [1] : vector<8x8xf32> to vector<8xf32>
    %85 = vector.shape_cast %84 : vector<8xf32> to vector<8x1xf32>
    %86 = vector.broadcast %85 : vector<8x1xf32> to vector<8x8xf32>
    %87 = arith.subf %83, %86 : vector<8x8xf32>
    %88 = math.exp %87 : vector<8x8xf32>
    %cst_34 = arith.constant dense<0.000000e+00> : vector<8xf32>
    %89 = vector.multi_reduction <add>, %88, %cst_34 [1] : vector<8x8xf32> to vector<8xf32>
    %90 = vector.shape_cast %89 : vector<8xf32> to vector<8x1xf32>
    %91 = tpu.reciprocal %90 {approx = true} : vector<8x1xf32> -> vector<8x1xf32>
    %92 = vector.broadcast %91 : vector<8x1xf32> to vector<8x8xf32>
    %93 = arith.mulf %88, %92 : vector<8x8xf32>
    %94 = arith.truncf %93 : vector<8x8xf32> to vector<8x8xbf16>
    %cst_35 = arith.constant dense<0.000000e+00> : vector<8x32xf32>
    %95 = tpu.matmul %94, %36, %cst_35 {dimension_numbers = #tpu.dot_dimension_numbers<[1], [0], [0], [1], [0, 0, 1, 1], [], []>} : vector<8x8xbf16>, vector<8x32xbf16>, vector<8x32xf32> -> vector<8x32xf32>
    %96 = arith.truncf %95 : vector<8x32xf32> to vector<8x32xbf16>
    %c32 = arith.constant 32 : index
    %c0_36 = arith.constant 0 : index
    %97 = vector.load %arg8[%c32, %c0_36] : memref<128x128xbf16, #tpu.memory_space<vmem>>, vector<32x128xbf16>
    %cst_37 = arith.constant dense<0.000000e+00> : vector<8x128xf32>
    %98 = tpu.matmul %96, %97, %cst_37 {dimension_numbers = #tpu.dot_dimension_numbers<[1], [0], [0], [1], [0, 0, 1, 1], [], []>} : vector<8x32xbf16>, vector<32x128xbf16>, vector<8x128xf32> -> vector<8x128xf32>
    %99 = arith.addf %72, %98 : vector<8x128xf32>
    %100 = vector.extract_strided_slice %20 {offsets = [0, 64], sizes = [8, 32], strides = [1, 1]} : vector<8x128xf32> to vector<8x32xf32>
    %101 = arith.mulf %100, %23 : vector<8x32xf32>
    %cst_38 = arith.constant dense<0.000000e+00> : vector<8x32xf32>
    %102 = tpu.matmul %100, %25, %cst_38 {dimension_numbers = #tpu.dot_dimension_numbers<[1], [0], [0], [1], [0, 0, 1, 1], [], []>} : vector<8x32xf32>, vector<32x32xf32>, vector<8x32xf32> -> vector<8x32xf32>
    %103 = arith.mulf %102, %24 : vector<8x32xf32>
    %104 = arith.addf %101, %103 : vector<8x32xf32>
    %105 = arith.truncf %104 : vector<8x32xf32> to vector<8x32xbf16>
    %cst_39 = arith.constant dense<0.000000e+00> : vector<8x8xf32>
    %106 = tpu.matmul %105, %42, %cst_39 {dimension_numbers = #tpu.dot_dimension_numbers<[1], [1], [0], [0], [0, 0, 1, 0], [], []>} : vector<8x32xbf16>, vector<8x32xbf16>, vector<8x8xf32> -> vector<8x8xf32>
    %cst_40 = arith.constant 0.176776692 : f32
    %107 = vector.broadcast %cst_40 : f32 to vector<8x8xf32>
    %108 = arith.mulf %106, %107 : vector<8x8xf32>
    %cst_41 = arith.constant -1.000000e+30 : f32
    %109 = vector.broadcast %cst_41 : f32 to vector<8x8xf32>
    %110 = arith.select %28, %108, %109 : vector<8x8xi1>, vector<8x8xf32>
    %cst_42 = arith.constant dense<0xFF800000> : vector<8xf32>
    %111 = vector.multi_reduction <maximumf>, %110, %cst_42 [1] : vector<8x8xf32> to vector<8xf32>
    %112 = vector.shape_cast %111 : vector<8xf32> to vector<8x1xf32>
    %113 = vector.broadcast %112 : vector<8x1xf32> to vector<8x8xf32>
    %114 = arith.subf %110, %113 : vector<8x8xf32>
    %115 = math.exp %114 : vector<8x8xf32>
    %cst_43 = arith.constant dense<0.000000e+00> : vector<8xf32>
    %116 = vector.multi_reduction <add>, %115, %cst_43 [1] : vector<8x8xf32> to vector<8xf32>
    %117 = vector.shape_cast %116 : vector<8xf32> to vector<8x1xf32>
    %118 = tpu.reciprocal %117 {approx = true} : vector<8x1xf32> -> vector<8x1xf32>
    %119 = vector.broadcast %118 : vector<8x1xf32> to vector<8x8xf32>
    %120 = arith.mulf %115, %119 : vector<8x8xf32>
    %121 = arith.truncf %120 : vector<8x8xf32> to vector<8x8xbf16>
    %cst_44 = arith.constant dense<0.000000e+00> : vector<8x32xf32>
    %122 = tpu.matmul %121, %44, %cst_44 {dimension_numbers = #tpu.dot_dimension_numbers<[1], [0], [0], [1], [0, 0, 1, 1], [], []>} : vector<8x8xbf16>, vector<8x32xbf16>, vector<8x32xf32> -> vector<8x32xf32>
    %123 = arith.truncf %122 : vector<8x32xf32> to vector<8x32xbf16>
    %c64 = arith.constant 64 : index
    %c0_45 = arith.constant 0 : index
    %124 = vector.load %arg8[%c64, %c0_45] : memref<128x128xbf16, #tpu.memory_space<vmem>>, vector<32x128xbf16>
    %cst_46 = arith.constant dense<0.000000e+00> : vector<8x128xf32>
    %125 = tpu.matmul %123, %124, %cst_46 {dimension_numbers = #tpu.dot_dimension_numbers<[1], [0], [0], [1], [0, 0, 1, 1], [], []>} : vector<8x32xbf16>, vector<32x128xbf16>, vector<8x128xf32> -> vector<8x128xf32>
    %126 = arith.addf %99, %125 : vector<8x128xf32>
    %127 = vector.extract_strided_slice %20 {offsets = [0, 96], sizes = [8, 32], strides = [1, 1]} : vector<8x128xf32> to vector<8x32xf32>
    %128 = arith.mulf %127, %23 : vector<8x32xf32>
    %cst_47 = arith.constant dense<0.000000e+00> : vector<8x32xf32>
    %129 = tpu.matmul %127, %25, %cst_47 {dimension_numbers = #tpu.dot_dimension_numbers<[1], [0], [0], [1], [0, 0, 1, 1], [], []>} : vector<8x32xf32>, vector<32x32xf32>, vector<8x32xf32> -> vector<8x32xf32>
    %130 = arith.mulf %129, %24 : vector<8x32xf32>
    %131 = arith.addf %128, %130 : vector<8x32xf32>
    %132 = arith.truncf %131 : vector<8x32xf32> to vector<8x32xbf16>
    %cst_48 = arith.constant dense<0.000000e+00> : vector<8x8xf32>
    %133 = tpu.matmul %132, %42, %cst_48 {dimension_numbers = #tpu.dot_dimension_numbers<[1], [1], [0], [0], [0, 0, 1, 0], [], []>} : vector<8x32xbf16>, vector<8x32xbf16>, vector<8x8xf32> -> vector<8x8xf32>
    %cst_49 = arith.constant 0.176776692 : f32
    %134 = vector.broadcast %cst_49 : f32 to vector<8x8xf32>
    %135 = arith.mulf %133, %134 : vector<8x8xf32>
    %cst_50 = arith.constant -1.000000e+30 : f32
    %136 = vector.broadcast %cst_50 : f32 to vector<8x8xf32>
    %137 = arith.select %28, %135, %136 : vector<8x8xi1>, vector<8x8xf32>
    %cst_51 = arith.constant dense<0xFF800000> : vector<8xf32>
    %138 = vector.multi_reduction <maximumf>, %137, %cst_51 [1] : vector<8x8xf32> to vector<8xf32>
    %139 = vector.shape_cast %138 : vector<8xf32> to vector<8x1xf32>
    %140 = vector.broadcast %139 : vector<8x1xf32> to vector<8x8xf32>
    %141 = arith.subf %137, %140 : vector<8x8xf32>
    %142 = math.exp %141 : vector<8x8xf32>
    %cst_52 = arith.constant dense<0.000000e+00> : vector<8xf32>
    %143 = vector.multi_reduction <add>, %142, %cst_52 [1] : vector<8x8xf32> to vector<8xf32>
    %144 = vector.shape_cast %143 : vector<8xf32> to vector<8x1xf32>
    %145 = tpu.reciprocal %144 {approx = true} : vector<8x1xf32> -> vector<8x1xf32>
    %146 = vector.broadcast %145 : vector<8x1xf32> to vector<8x8xf32>
    %147 = arith.mulf %142, %146 : vector<8x8xf32>
    %148 = arith.truncf %147 : vector<8x8xf32> to vector<8x8xbf16>
    %cst_53 = arith.constant dense<0.000000e+00> : vector<8x32xf32>
    %149 = tpu.matmul %148, %44, %cst_53 {dimension_numbers = #tpu.dot_dimension_numbers<[1], [0], [0], [1], [0, 0, 1, 1], [], []>} : vector<8x8xbf16>, vector<8x32xbf16>, vector<8x32xf32> -> vector<8x32xf32>
    %150 = arith.truncf %149 : vector<8x32xf32> to vector<8x32xbf16>
    %c96 = arith.constant 96 : index
    %c0_54 = arith.constant 0 : index
    %151 = vector.load %arg8[%c96, %c0_54] : memref<128x128xbf16, #tpu.memory_space<vmem>>, vector<32x128xbf16>
    %cst_55 = arith.constant dense<0.000000e+00> : vector<8x128xf32>
    %152 = tpu.matmul %150, %151, %cst_55 {dimension_numbers = #tpu.dot_dimension_numbers<[1], [0], [0], [1], [0, 0, 1, 1], [], []>} : vector<8x32xbf16>, vector<32x128xbf16>, vector<8x128xf32> -> vector<8x128xf32>
    %153 = arith.addf %126, %152 : vector<8x128xf32>
    %154 = arith.addf %0, %153 : vector<8x128xf32>
    %155 = arith.mulf %154, %154 : vector<8x128xf32>
    %cst_56 = arith.constant dense<0.000000e+00> : vector<8xf32>
    %156 = vector.multi_reduction <add>, %155, %cst_56 [1] : vector<8x128xf32> to vector<8xf32>
    %157 = vector.shape_cast %156 : vector<8xf32> to vector<8x1xf32>
    %cst_57 = arith.constant 1.280000e+02 : f32
    %158 = vector.broadcast %cst_57 : f32 to vector<8x1xf32>
    %159 = arith.divf %157, %158 : vector<8x1xf32>
    %cst_58 = arith.constant 9.99999974E-6 : f32
    %160 = vector.broadcast %cst_58 : f32 to vector<8x1xf32>
    %161 = arith.addf %159, %160 : vector<8x1xf32>
    %162 = math.rsqrt %161 : vector<8x1xf32>
    %163 = vector.broadcast %162 : vector<8x1xf32> to vector<8x128xf32>
    %164 = arith.mulf %154, %163 : vector<8x128xf32>
    %c0_59 = arith.constant 0 : index
    %c0_60 = arith.constant 0 : index
    %165 = vector.load %arg5[%c0_59, %c0_60] : memref<1x128xf32, #tpu.memory_space<vmem>>, vector<1x128xf32>
    %166 = vector.broadcast %165 : vector<1x128xf32> to vector<8x128xf32>
    %167 = arith.mulf %164, %166 : vector<8x128xf32>
    %168 = arith.truncf %167 : vector<8x128xf32> to vector<8x128xbf16>
    %c0_61 = arith.constant 0 : index
    %c0_62 = arith.constant 0 : index
    %169 = vector.load %arg9[%c0_61, %c0_62] : memref<128x512xbf16, #tpu.memory_space<vmem>>, vector<128x512xbf16>
    %cst_63 = arith.constant dense<0.000000e+00> : vector<8x512xf32>
    %170 = tpu.matmul %168, %169, %cst_63 {dimension_numbers = #tpu.dot_dimension_numbers<[1], [0], [0], [1], [0, 0, 1, 1], [], []>} : vector<8x128xbf16>, vector<128x512xbf16>, vector<8x512xf32> -> vector<8x512xf32>
    %171 = vector.extract_strided_slice %170 {offsets = [0, 0], sizes = [8, 256], strides = [1, 1]} : vector<8x512xf32> to vector<8x256xf32>
    %172 = vector.extract_strided_slice %170 {offsets = [0, 256], sizes = [8, 256], strides = [1, 1]} : vector<8x512xf32> to vector<8x256xf32>
    %173 = arith.negf %171 : vector<8x256xf32>
    %174 = math.exp %173 : vector<8x256xf32>
    %cst_64 = arith.constant 1.000000e+00 : f32
    %175 = vector.broadcast %cst_64 : f32 to vector<8x256xf32>
    %176 = arith.addf %175, %174 : vector<8x256xf32>
    %177 = arith.divf %175, %176 : vector<8x256xf32>
    %178 = arith.mulf %171, %177 : vector<8x256xf32>
    %179 = arith.mulf %178, %172 : vector<8x256xf32>
    %180 = arith.truncf %179 : vector<8x256xf32> to vector<8x256xbf16>
    %c0_65 = arith.constant 0 : index
    %c0_66 = arith.constant 0 : index
    %181 = vector.load %arg10[%c0_65, %c0_66] : memref<256x128xbf16, #tpu.memory_space<vmem>>, vector<256x128xbf16>
    %cst_67 = arith.constant dense<0.000000e+00> : vector<8x128xf32>
    %182 = tpu.matmul %180, %181, %cst_67 {dimension_numbers = #tpu.dot_dimension_numbers<[1], [0], [0], [1], [0, 0, 1, 1], [], []>} : vector<8x256xbf16>, vector<256x128xbf16>, vector<8x128xf32> -> vector<8x128xf32>
    %183 = arith.addf %154, %182 : vector<8x128xf32>
    %c0_68 = arith.constant 0 : index
    %c0_69 = arith.constant 0 : index
    %184 = vector.load %arg12[%c0_68, %c0_69] : memref<8x128xf32, #tpu.memory_space<vmem>>, vector<8x128xf32>
    tpu.vector_store %arg12[%c0_68, %c0_69], %183 {strides = array<i32>} : memref<8x128xf32, #tpu.memory_space<vmem>>, vector<8x128xf32>,
    return
  }
  func.func @transform_0(%arg0: i32) -> (i32, i32) {
    %c0_i32 = arith.constant 0 : i32
    %c0_i32_0 = arith.constant 0 : i32
    return %arg0, %c0_i32 : i32, i32
  }
  func.func @transform_1(%arg0: i32) -> (i32, i32) {
    %c0_i32 = arith.constant 0 : i32
    %c0_i32_0 = arith.constant 0 : i32
    return %arg0, %c0_i32 : i32, i32
  }
  func.func @transform_2(%arg0: i32) -> (i32, i32) {
    %c0_i32 = arith.constant 0 : i32
    %c0_i32_0 = arith.constant 0 : i32
    return %arg0, %c0_i32 : i32, i32
  }
  func.func @transform_3(%arg0: i32) -> (i32, i32) {
    %c0_i32 = arith.constant 0 : i32
    %c0_i32_0 = arith.constant 0 : i32
    %c0_i32_1 = arith.constant 0 : i32
    return %c0_i32, %c0_i32_0 : i32, i32
  }
  func.func @transform_4(%arg0: i32) -> (i32, i32) {
    %c0_i32 = arith.constant 0 : i32
    %c0_i32_0 = arith.constant 0 : i32
    %c0_i32_1 = arith.constant 0 : i32
    return %c0_i32, %c0_i32_0 : i32, i32
  }
  func.func @transform_5(%arg0: i32) -> (i32, i32) {
    %c0_i32 = arith.constant 0 : i32
    %c0_i32_0 = arith.constant 0 : i32
    %c0_i32_1 = arith.constant 0 : i32
    return %c0_i32, %c0_i32_0 : i32, i32
  }
  func.func @transform_6(%arg0: i32) -> (i32, i32) {
    %c0_i32 = arith.constant 0 : i32
    %c0_i32_0 = arith.constant 0 : i32
    %c0_i32_1 = arith.constant 0 : i32
    return %c0_i32, %c0_i32_0 : i32, i32
  }
  func.func @transform_7(%arg0: i32) -> (i32, i32) {
    %c0_i32 = arith.constant 0 : i32
    %c0_i32_0 = arith.constant 0 : i32
    %c0_i32_1 = arith.constant 0 : i32
    return %c0_i32, %c0_i32_0 : i32, i32
  }
  func.func @transform_8(%arg0: i32) -> (i32, i32) {
    %c0_i32 = arith.constant 0 : i32
    %c0_i32_0 = arith.constant 0 : i32
    %c0_i32_1 = arith.constant 0 : i32
    return %c0_i32, %c0_i32_0 : i32, i32
  }
  func.func @transform_9(%arg0: i32) -> (i32, i32) {
    %c0_i32 = arith.constant 0 : i32
    %c0_i32_0 = arith.constant 0 : i32
    %c0_i32_1 = arith.constant 0 : i32
    return %c0_i32, %c0_i32_0 : i32, i32
  }
  func.func @transform_10(%arg0: i32) -> (i32, i32) {
    %c0_i32 = arith.constant 0 : i32
    %c0_i32_0 = arith.constant 0 : i32
    %c0_i32_1 = arith.constant 0 : i32
    return %c0_i32, %c0_i32_0 : i32, i32
  }
  func.func @transform_11(%arg0: i32) -> (i32, i32) {
    %c0_i32 = arith.constant 0 : i32
    %c0_i32_0 = arith.constant 0 : i32
    return %arg0, %c0_i32 : i32, i32
  }
}

</mosaic_0001>

<bundles_post_ra>
// kernel: glm_forward.6
= control target key start
LH: loop header
LB: loop body
LE: loop exit
PB: predicated region body
PF: predicated region fallthrough
CT: control target
= control target key end

     0   :  { %s198_s6 = smov 0   ;;  %s218_s0 = inlined_call_operand.vmem [shape: f32[16,128], index: 0, kind: input, shape index: {}]   ;;  %s219_s1 = inlined_call_operand.vmem [shape: f32[16,1], index: 1, kind: output, shape index: {}]  }
   0x1 LB: > { %s175_s7 = sadd.s32 4294967295, %s200_s6   ;;  %p179_p0 = scmp.ge.s32.totalorder %s200_s6, 1  ;;  %s200_s6 = sphi %s198_s6, %s11_s6  }
   0x2   : > { %p86_p1 = scmp.lt.s32.totalorder %s200_s6, 3 }
   0x4   : > { %p87_p2 = pnand %p179_p0, %p86_p1 }
   0x5   : > { %p104_p3 = scmp.lt.s32.totalorder (!%p87_p2), %s175_s7, 1  ;;  %vm120_vm0 = vcmask (!%p87_p2), 7168  }
   0x6   : > { %90 = sbr.rel (%p87_p2) target bundleno = 177 (0xb1), region = 24 }
   0xd   : > { %s221_s7 = smov (!%p104_p3, %s175_s7), 1 }
   0xe   : > { %s180_s8 = sshll.u32 %s221_s7, 3 }
   0xf   : > { %s107_s11 = scalar_lea.vmem %s218_s0, %s180_s8  ;;  %s111_s14 = scalar_lea.vmem %s219_s1, %s180_s8 }
  0x10   : > { %v112_v0 = vld [vmem:[%s107_s11] sm:$0xff] }
  0x11   : > { %v113_v1 = vmul.f32 %v112_v0, %v112_v0 }
  0x13   : > { %114 = vadd.xlane.f32.xlu0 %v113_v1 }
  0xa0   : > { %v115_v2 = vpop.xlane.xlu0 %114 }
  0xa1   : > { %v117_v3 = vmul.f32 0.0078125, %v115_v2 }
  0xa3   : > { %v118_v4 = vadd.f32 1e-05, %v117_v3 }
  0xa5   : > { %192 = vrsqrt.f32 %v118_v4 }
  0xaf   : > { %v193_v5 = vpop.eup %192 }
  0xb0   : > { %121 = vst.msk [vmem:[%s111_s14] sm:$0xff] %vm120_vm0, %v193_v5 }
  0xb1 PF: > { %s11_s6 = sadd.s32 1, %s200_s6  }
  0xb2   : > { %p8_p4 = scmp.ge.s32.totalorder %s11_s6, 4  }
  0xb4   :  { %10 = sbr.rel (!%p8_p4) target bundleno = 1 (0x1), region = 54 }

// kernel: glm_forward.7
= control target key start
LH: loop header
LB: loop body
LE: loop exit
PB: predicated region body
PF: predicated region fallthrough
CT: control target
= control target key end

     0   :  { %s1153_s0 = inlined_call_operand.vmem [shape: f32[16,128], index: 0, kind: input, shape index: {}]   ;;  %s1154_s1 = inlined_call_operand.vmem [shape: f32[16,1], index: 1, kind: input, shape index: {}]   ;;  %s1155_s2 = inlined_call_operand.vmem [shape: f32[1,128], index: 2, kind: input, shape index: {}]   ;;  %s1156_s3 = inlined_call_operand.vmem [shape: bf16[128,256], index: 3, kind: input, shape index: {}]   ;;  %s1157_s4 = inlined_call_operand.hbm [shape: f32[16,256], index: 4, kind: output, shape index: {}]  }
   0x1   :  { %1158 = sst [smem:[#allocation7_spill]] %s1154_s1 }
   0x2   :  { %1159 = sst [smem:[#allocation8_spill]] %s1156_s3 }
   0x3   :  { %9 = vsyncpa [#allocation5], 0 }
   0x4   :  { %11 = vsyncpa [#allocation5 + $0x1], 0  ;;  %s951_s15 = smov 0   ;;  %s953_s16 = smov 0  }
   0x5   :  { %s955_s17 = smov 0   ;;  %s957_s18 = smov 0  }
   0x6   :  { %s959_s19 = smov 0   ;;  %s961_s20 = smov 0  }
   0x7   :  { %s963_s21 = smov 0   ;;  %s965_s22 = smov 0  }
   0x8   :  { %s967_s23 = smov 0   ;;  %s969_s24 = smov 0  }
   0x9 LB: > { %s656_s25 = sadd.s32 4294967295, %s920_s24   ;;  %s657_s26 = sadd.s32 4294967294, %s920_s24   ;;  %s920_s24 = sphi %s969_s24, %s17_s24   ;;  %s916_s23 = sphi %s967_s23, %s1173_s23   ;;  %s912_s22 = sphi %s965_s22, %s1172_s22   ;;  %s908_s21 = sphi %s963_s21, %s1171_s21   ;;  %s904_s20 = sphi %s961_s20, %s1170_s20   ;;  %s900_s19 = sphi %s959_s19, %s1169_s19   ;;  %s896_s18 = sphi %s957_s18, %s1168_s18   ;;  %s892_s17 = sphi %s955_s17, %s1167_s17   ;;  %s888_s16 = sphi %s953_s16, %s1166_s16   ;;  %s884_s15 = sphi %s951_s15, %s1165_s15  }
   0xa   : > { %s32_s27 = sadd.s32 1, %s912_s22  ;;  %s36_s28 = sadd.s32 1, %s916_s23 }
   0xb   : > { %p34_p0 = scmp.ge.s32.totalorder %s32_s27, 2  ;;  %s125_s29 = sadd.s32 1, %s900_s19 }
   0xc   : > { %p132_p1 = scmp.ne.s32.totalorder %s900_s19, %s896_s18  ;;  %p133_p2 = scmp.eq.s32.totalorder %s920_s24, 0 }
   0xd   : > { %s1175_s27 = smov (%p34_p0, %s32_s27), 0  ;;  %s1177_s28 = smov (!%p34_p0, %s36_s28), %s916_s23 }
   0xe   : > { %s121_s30 = ssub.s32 %s912_s22, %s1175_s27  ;;  %p1014_p3 = por %p133_p2, %p132_p1 }
   0xf   : > { %p38_p4 = scmp.ge.s32.totalorder %s1177_s28, 2  ;;  %p123_p5 = scmp.eq.s32.totalorder %s121_s30, 0 }
  0x10   : > { %s153_s6 = sadd.s32 1, %s892_s17  ;;  %p163_p6 = scmp.ne.s32.totalorder %s892_s17, %s888_s16 }
  0x11   : > { %s1179_s28 = smov (%p38_p4, %s1177_s28), 0  ;;  %p164_p7 = scmp.eq.s32.totalorder %s656_s25, 3 }
  0x12   : > { %s1024_s7 = scalar_select %p123_p5, %s900_s19, %s125_s29  }
  0x13   : > { %s148_s8 = ssub.s32 %s916_s23, %s1179_s28  ;;  %p169_p8 = scmp.ne.s32.totalorder %s888_s16, %s884_s15 }
  0x14   : > { %s150_s9 = sor.u32 %s148_s8, %s121_s30  ;;  %p1030_p10 = por %p164_p7, %p163_p6 }
  0x15   : > { %p151_p9 = scmp.eq.s32.totalorder %s150_s9, 0  ;;  %p170_p11 = scmp.eq.s32.totalorder %s657_s26, 3 }
  0x16   : > { %p660_p13 = scmp.ge.s32.totalorder %s920_s24, 4 }
  0x17   : > { %s1035_s11 = scalar_select %p151_p9, %s892_s17, %s153_s6  }
  0x18   : > { %p1037_p12 = por %p170_p11, %p169_p8  ;;  %192 = sbr.rel (%p660_p13) target bundleno = 51 (0x33), region = 20 }
  0x1f   : > { %212 = sbr.rel (!%p1014_p3) target bundleno = 51 (0x33), region = 32  ;;  %s214_s13 = sand.u32 (%p1014_p3), 1, %s900_s19  }
  0x20   : > { %s662_s14 = sshll.u32 (%p1014_p3), %s912_s22, 2  ;;  %s661_s25 = sshll.u32 (%p1014_p3), %s214_s13, 6 }
  0x21   : > { %s1163_s3 = sld [smem:[#allocation8_spill]] (%p1014_p3)  ;;  %s216_s5 = scalar_lea.vmem (%p1014_p3), [#allocation3], %s661_s25 }
  0x27   : > { %s1049_s26 = scalar_lea.vmem %s1163_s3, %s662_s14 }
  0x28   : > { %v237_v0 = vld [vmem:[%s1049_s26] sm:$0xf]  ;;  %v239_v1 = vld [vmem:[%s1049_s26 + $0x8] sm:$0xf]  ;;  %v241_v2 = vld [vmem:[%s1049_s26 + $0x10] sm:$0xf] }
  0x29   : > { %238 = vst [vmem:[%s216_s5] sm:$0xf] %v237_v0  ;;  %240 = vst [vmem:[%s216_s5 + $0x4] sm:$0xf] %v239_v1  ;;  %v243_v3 = vld [vmem:[%s1049_s26 + $0x18] sm:$0xf] }
  0x2a   : > { %v245_v4 = vld [vmem:[%s1049_s26 + $0x20] sm:$0xf]  ;;  %242 = vst [vmem:[%s216_s5 + $0x8] sm:$0xf] %v241_v2  ;;  %244 = vst [vmem:[%s216_s5 + $0xc] sm:$0xf] %v243_v3 }
  0x2b   : > { %246 = vst [vmem:[%s216_s5 + $0x10] sm:$0xf] %v245_v4  ;;  %v247_v5 = vld [vmem:[%s1049_s26 + $0x28] sm:$0xf]  ;;  %v249_v6 = vld [vmem:[%s1049_s26 + $0x30] sm:$0xf] }
  0x2c   : > { %v251_v7 = vld [vmem:[%s1049_s26 + $0x38] sm:$0xf]  ;;  %248 = vst [vmem:[%s216_s5 + $0x14] sm:$0xf] %v247_v5  ;;  %250 = vst [vmem:[%s216_s5 + $0x18] sm:$0xf] %v249_v6 }
  0x2d   : > { %252 = vst [vmem:[%s216_s5 + $0x1c] sm:$0xf] %v251_v7  ;;  %v253_v8 = vld [vmem:[%s1049_s26 + $0x40] sm:$0xf]  ;;  %v255_v9 = vld [vmem:[%s1049_s26 + $0x48] sm:$0xf] }
  0x2e   : > { %v257_v10 = vld [vmem:[%s1049_s26 + $0x50] sm:$0xf]  ;;  %254 = vst [vmem:[%s216_s5 + $0x20] sm:$0xf] %v253_v8  ;;  %256 = vst [vmem:[%s216_s5 + $0x24] sm:$0xf] %v255_v9 }
  0x2f   : > { %258 = vst [vmem:[%s216_s5 + $0x28] sm:$0xf] %v257_v10  ;;  %v259_v11 = vld [vmem:[%s1049_s26 + $0x58] sm:$0xf]  ;;  %v261_v12 = vld [vmem:[%s1049_s26 + $0x60] sm:$0xf] }
  0x30   : > { %v263_v13 = vld [vmem:[%s1049_s26 + $0x68] sm:$0xf]  ;;  %260 = vst [vmem:[%s216_s5 + $0x2c] sm:$0xf] %v259_v11  ;;  %262 = vst [vmem:[%s216_s5 + $0x30] sm:$0xf] %v261_v12 }
  0x31   : > { %264 = vst [vmem:[%s216_s5 + $0x34] sm:$0xf] %v263_v13  ;;  %v265_v14 = vld [vmem:[%s1049_s26 + $0x70] sm:$0xf]  ;;  %v267_v15 = vld [vmem:[%s1049_s26 + $0x78] sm:$0xf] }
  0x32   : > { %266 = vst [vmem:[%s216_s5 + $0x38] sm:$0xf] %v265_v14  ;;  %268 = vst [vmem:[%s216_s5 + $0x3c] sm:$0xf] %v267_v15 }
  0x33 PF: > { %p663_p0 = scmp.ge.s32.totalorder %s920_s24, 1  ;;  %p322_p1 = scmp.lt.s32.totalorder %s920_s24, 5 }
  0x35   : > { %p323_p2 = pnand %p663_p0, %p322_p1 }
  0x36   : > { %p368_p3 = scmp.lt.s32.totalorder (!%p323_p2), %s908_s21, 1  ;;  %s329_s6 = sand.u32 (!%p323_p2), 1, %s896_s18   ;;  %v922_v16 = vmov (!%p323_p2), 0   ;;  %v923_v17 = vmov (!%p323_p2), 0.0   ;;  %vm924_vm0 = vmmov (!%p323_p2), 0  }
  0x37   : > { %326 = sbr.rel (%p323_p2) target bundleno = 428 (0x1ac), region = 73  ;;  %801 = vset.pattern.permute.xlu0 (!%p323_p2), %v922_v16  ;;  %691 = vmatprep.subr.bf16.mxu0 (!%p323_p2), %v923_v17  ;;  %s664_s8 = sshll.u32 (!%p323_p2), %s329_s6, 6  ;;  %v668_v28 = vld [vmem:[%s1155_s2] ss:$0 sm:$0xff] (!%p323_p2) }
  0x38   : > { %s331_s14 = scalar_lea.vmem (!%p323_p2), [#allocation3], %s664_s8  ;;  %s1164_s1 = sld [smem:[#allocation7_spill]] (!%p323_p2)  ;;  %707 = vmatprep.mubr.msk.bf16.mxu0 (!%p323_p2), %vm924_vm0, %v923_v17 }
  0x39   : > { %v802_v18 = vld [vmem:[%s331_s14] sm:$0xff] (!%p323_p2)   ;;  %v803_v19 = vld [vmem:[%s331_s14 + $0x8] sm:$0xff] (!%p323_p2)   ;;  %v804_v21 = vld [vmem:[%s331_s14 + $0x10] sm:$0xff] (!%p323_p2)   ;;  %s365_s25 = sand.u32 (!%p323_p2), 1, %s888_s16   ;;  %s678_s29 = sshll.u32 (!%p323_p2), %s908_s21, 1 }
  0x3a   : > { %692 = vmatpush3.bf16.msra.mxu0 (!%p323_p2), %v802_v18  ;;  %v805_v22 = vld [vmem:[%s331_s14 + $0x18] sm:$0xff] (!%p323_p2)   ;;  %v806_v23 = vld [vmem:[%s331_s14 + $0x20] sm:$0xff] (!%p323_p2)   ;;  %v807_v24 = vld [vmem:[%s331_s14 + $0x28] sm:$0xff] (!%p323_p2)  }
  0x3b   : > { %693 = vmatprep.subr.bf16.mxu0 (!%p323_p2), %v923_v17  ;;  %v808_v25 = vld [vmem:[%s331_s14 + $0x30] sm:$0xff] (!%p323_p2)   ;;  %v809_v26 = vld [vmem:[%s331_s14 + $0x38] sm:$0xff] (!%p323_p2)   ;;  %s665_s14 = sshll.u32 (!%p323_p2), %s365_s25, 3 }
  0x3e   : > { %s1072_s9 = scalar_select %p368_p3, %s908_s21, 1  ;;  %694 = vmatpush3.bf16.msra.mxu0 %v803_v19 }
  0x3f   : > { %695 = vmatprep.subr.bf16.mxu0 %v923_v17 }
  0x40   : > { %s666_s13 = sshll.u32 %s1072_s9, 3  ;;  %s367_s9 = scalar_lea.vmem [#allocation4], %s665_s14 }
  0x41   : > { %s378_s30 = scalar_lea.vmem %s1164_s1, %s666_s13  ;;  %s374_s5 = scalar_lea.vmem %s1153_s0, %s666_s13 }
  0x42   : > { %v390_v20 = vld [vmem:[%s378_s30] sm:$0xff]  ;;  %696 = vmatpush3.bf16.msra.mxu0 %v804_v21  ;;  %s530_s30 = sadd.s32 %s904_s20, %s678_s29  ;;  %s534_s1 = sshll.u32 %s367_s9, 4  ;;  %s1091_s1 = int_to_ptr.vmem [resolvable:$true] %s534_s1 }
  0x43   : > { %393 = vperm.xlu0 %801, %v390_v20   ;;  %697 = vmatprep.subr.bf16.mxu0 %v923_v17  ;;  %v389_v27 = vld [vmem:[%s374_s5] sm:$0xff]  ;;  %s679_s3 = sshll.u32 %s530_s30, 7  ;;  %s519_s5 = scalar_lea.sflag [#allocation5], %s365_s25 }
  0x44   : > { %s1096_s26 = scalar_lea.hbm %s1157_s4, %s679_s3  ;;  %s810_s21 = scalar_lea.vmem %s1091_s1, 128 }
  0x45   : > { %p811_p4 = scmp.ne.s32.totalorder %s1091_s1, %s810_s21  ;;  %s925_s20 = smov [#allocation4]  }
  0x46   : > { %698 = vmatpush3.bf16.msra.mxu0 %v805_v22  ;;  %s814_s6 = sshll.u32 %s925_s20, 4  ;;  %s815_s6 = int_to_ptr.vmem [resolvable:$false] %s814_s6 }
  0x47   : > { %699 = vmatprep.subr.bf16.mxu0 %v923_v17  ;;  %p812_p5 = pnand %p811_p4, %p1030_p10  ;;  %s816_s8 = scalar_lea.vmem %s815_s6, 256 }
  0x48   : > { %p817_p7 = scmp.lt.s32.totalorder %s1091_s1, %s815_s6  ;;  %p818_p8 = scmp.lt.s32.totalorder %s816_s8, %s810_s21 }
  0x49   : > { %p813_p6 = pneg %p812_p5 }
  0x4a   : > { %700 = vmatpush3.bf16.msra.mxu0 %v806_v23  ;;  %p819_p9 = por %p818_p8, %p817_p7 }
  0x4b   : > { %701 = vmatprep.subr.bf16.mxu0 %v923_v17 }
  0x4c   : > { %p820_p11 = pnand %p819_p9, %p813_p6 }
  0x4e   : > { %702 = vmatpush3.bf16.msra.mxu0 %v807_v24 }
  0x4f   : > { %703 = vmatprep.subr.bf16.mxu0 %v923_v17 }
  0x52   : > { %704 = vmatpush3.bf16.msra.mxu0 %v808_v25 }
  0x53   : > { %705 = vmatprep.subr.bf16.mxu0 %v923_v17 }
  0x56   : > { %706 = vmatpush3.bf16.msra.mxu0 %v809_v26 }
  0xc2   : > { %v394_v29 = vpop.permute.xlu0 %393 }
  0xc3   : > { %v396_v30 = vmul.f32 %v394_v29, %v389_v27 }
  0xc5   : > { %v404_v31 = vmul.f32 %v668_v28, %v396_v30 }
  0xc7   : > { %v406_v32 = vpack.c.bf16 %v404_v31, %v404_v31 }
  0xc9   : > { %708 = vmatmul.mubr.bf16.vlgmr.msra.gmra.mrb[0].mxu0 %v406_v32 }
 0x19c   : > { %v505_v33 = vpop.f32.mrb[0].mxu0 }
 0x19d   : > { %517 = vst [vmem:[%s367_s9] sm:$0xff] %v505_v33  ;;  %v709_v34 = vpop.f32.mrb[1].mxu0 }
 0x19e   : > { %v508_v35 = vpop.f32.mrb[2].mxu0 }
 0x19f   : > { %823 = shalt.err (!%p820_p11)
}
 0x1a0   : > { %s824_s3 = scalar_lea.hbm %s1096_s26, 128  ;;  %s828_s29 = scalar_lea.hbm %s1157_s4, 512 }
 0x1a1   : > { %p825_p13 = scmp.ne.s32.totalorder %s1096_s26, %s824_s3  ;;  %p829_p2 = scmp.lt.u32.totalorder %s1096_s26, %s1157_s4 }
 0x1a2   : > { %p830_p3 = scmp.lt.u32.totalorder %s828_s29, %s824_s3  ;;  %p832_p5 = scmp.lt.u32.totalorder %s824_s3, %s1096_s26 }
 0x1a3   : > { %p826_p0 = pnand %p825_p13, %p1030_p10 }
 0x1a4   : > { %p831_p4 = por %p830_p3, %p829_p2 }
 0x1a5   : > { %p827_p1 = pneg %p826_p0 }
 0x1a6   : > { %p833_p6 = por %p832_p5, %p831_p4 }
 0x1a8   : > { %p834_p7 = pnand %p833_p6, %p827_p1 }
 0x1aa   : > { %837 = shalt.err (!%p834_p7)
}
 0x1ab   : > { %711 = dma.vmem_to_hbm [thread:$0]  (%p1030_p10), %s1091_s1, 128, %s1096_s26, %s519_s5   ;;  %v710_v36 = vpop.f32.mrb[3].mxu0 }
 0x1ac PF: > { %p717_p8 = scmp.ge.s32.totalorder %s920_s24, 2  ;;  %s546_s13 = sand.u32 1, %s884_s15  }
 0x1ad   : > { %s547_s18 = scalar_lea.sflag [#allocation5], %s546_s13 }
 0x1ae   : > { %p714_p9 = pnand %p717_p8, %p1037_p12 }
 0x1b0   : > { %879 = dma.done.wait (!%p714_p9), %s547_s18, 128  }
 0x1b1   : > { %881 = vsyncadd (!%p714_p9), %s547_s18, 4294967168  ;;  %s17_s24 = sadd.s32 1, %s920_s24   ;;  %s1165_s15 = smov %s888_s16 }
 0x1b2   : > { %p14_p11 = scmp.ge.s32.totalorder %s17_s24, 6   ;;  %s1166_s16 = smov %s892_s17 }
 0x1b3   : > { %s1167_s17 = smov %s1035_s11  ;;  %s1168_s18 = smov %s900_s19 }
 0x1b4   : > { %s1169_s19 = smov %s1024_s7  ;;  %s1170_s20 = smov %s912_s22 }
 0x1b5   : > { %s1171_s21 = smov %s916_s23  ;;  %s1172_s22 = smov %s1175_s27 }
 0x1b6   : > { %s1173_s23 = smov %s1179_s28  ;;  %16 = sbr.rel (!%p14_p11) target bundleno = 9 (0x9), region = 134 }
 0x1bd   :  { %552 = vsyncpa [#allocation5], 1 }
 0x1be   :  { %554 = vsyncpa [#allocation5 + $0x1], 1 }

// kernel: glm_forward.4
= control target key start
LH: loop header
LB: loop body
LE: loop exit
PB: predicated region body
PF: predicated region fallthrough
CT: control target
= control target key end

     0   :  { %s2899_s17 = smov 0   ;;  %s3381_s0 = inlined_call_operand.vmem [shape: f32[16,128], index: 0, kind: input, shape index: {}]   ;;  %s3382_s1 = inlined_call_operand.vmem [shape: f32[16,32], index: 1, kind: input, shape index: {}]   ;;  %s3383_s2 = inlined_call_operand.vmem [shape: f32[16,32], index: 2, kind: input, shape index: {}]   ;;  %s3384_s3 = inlined_call_operand.vmem [shape: f32[1,128], index: 3, kind: input, shape index: {}]   ;;  %s3385_s4 = inlined_call_operand.vmem [shape: f32[1,128], index: 4, kind: input, shape index: {}]   ;;  %s3386_s5 = inlined_call_operand.vmem [shape: bf16[128,256], index: 5, kind: input, shape index: {}]   ;;  %s3387_s6 = inlined_call_operand.vmem [shape: f32[1,256], index: 6, kind: input, shape index: {}]   ;;  %s3388_s7 = inlined_call_operand.vmem [shape: bf16[128,128], index: 7, kind: input, shape index: {}]   ;;  %s3389_s8 = inlined_call_operand.vmem [shape: bf16[128,512], index: 8, kind: input, shape index: {}]   ;;  %s3390_s9 = inlined_call_operand.vmem [shape: bf16[256,128], index: 9, kind: input, shape index: {}]   ;;  %s3391_s10 = inlined_call_operand.vmem [shape: f32[32,32], index: 10, kind: input, shape index: {}]   ;;  %s3392_s11 = inlined_call_operand.vmem [shape: f32[16,128], index: 11, kind: output, shape index: {}]  }
   0x1 LB: > { %s2318_s18 = sadd.s32 4294967295, %s2830_s17   ;;  %p2322_p0 = scmp.ge.s32.totalorder %s2830_s17, 1  ;;  %s2830_s17 = sphi %s2899_s17, %s21_s17  }
   0x2   : > { %p354_p1 = scmp.lt.s32.totalorder %s2830_s17, 3 }
   0x4   : > { %p355_p2 = pnand %p2322_p0, %p354_p1 }
   0x5   : > { %p400_p3 = scmp.lt.s32.totalorder (!%p355_p2), %s2318_s18, 1  ;;  %v2700_v0 = vld [vmem:[%s3386_s5 + $0x4] ss:$8 sps:$4 sm:$0xff] (!%p355_p2)   ;;  %v2702_v1 = vld [vmem:[%s3386_s5] ss:$8 sps:$4 sm:$0xff] (!%p355_p2)   ;;  %v2832_v15 = vmov (!%p355_p2), 0   ;;  %v453_v35 = vlaneseq (!%p355_p2) }
   0x6   : > { %358 = sbr.rel (%p355_p2) target bundleno = 5511 (0x1587), region = 64  ;;  %543 = vmatprep.subr.bf16.mxu0 (!%p355_p2), %v2700_v0  ;;  %v2703_v2 = vld [vmem:[%s3386_s5 + $0x14] ss:$8 sps:$4 sm:$0xff] (!%p355_p2)   ;;  %v2705_v3 = vld [vmem:[%s3386_s5 + $0x10] ss:$8 sps:$4 sm:$0xff] (!%p355_p2)   ;;  %575 = vmatprep.mubr.bf16.mxu0 (!%p355_p2), %v2832_v15  ;;  %v586_v19 = vld [vmem:[%s3391_s10] sm:$0xff] (!%p355_p2) }
   0x7   : > { %544 = vmatpush1.bf16.msra.mxu0 (!%p355_p2), %v2702_v1  ;;  %v2706_v4 = vld [vmem:[%s3386_s5 + $0x24] ss:$8 sps:$4 sm:$0xff] (!%p355_p2)   ;;  %v2708_v5 = vld [vmem:[%s3386_s5 + $0x20] ss:$8 sps:$4 sm:$0xff] (!%p355_p2)   ;;  %v2709_v8 = vld [vmem:[%s3386_s5 + $0x34] ss:$8 sps:$4 sm:$0xff] (!%p355_p2)  }
   0x8   : > { %545 = vmatprep.subr.bf16.mxu0 (!%p355_p2), %v2703_v2  ;;  %v2711_v9 = vld [vmem:[%s3386_s5 + $0x30] ss:$8 sps:$4 sm:$0xff] (!%p355_p2)   ;;  %v2712_v10 = vld [vmem:[%s3386_s5 + $0x44] ss:$8 sps:$4 sm:$0xff] (!%p355_p2)   ;;  %v2714_v11 = vld [vmem:[%s3386_s5 + $0x40] ss:$8 sps:$4 sm:$0xff] (!%p355_p2)  }
   0x9   : > { %v2715_v12 = vld [vmem:[%s3386_s5 + $0x54] ss:$8 sps:$4 sm:$0xff] (!%p355_p2)   ;;  %v2717_v13 = vld [vmem:[%s3386_s5 + $0x50] ss:$8 sps:$4 sm:$0xff] (!%p355_p2)   ;;  %v2718_v14 = vld [vmem:[%s3386_s5 + $0x64] ss:$8 sps:$4 sm:$0xff] (!%p355_p2)  }
   0xa   : > { %v2720_v16 = vld [vmem:[%s3386_s5 + $0x60] ss:$8 sps:$4 sm:$0xff] (!%p355_p2)   ;;  %v2721_v17 = vld [vmem:[%s3386_s5 + $0x74] ss:$8 sps:$4 sm:$0xff] (!%p355_p2)   ;;  %v2723_v18 = vld [vmem:[%s3386_s5 + $0x70] ss:$8 sps:$4 sm:$0xff] (!%p355_p2)  }
   0xb   : > { %546 = vmatpush1.bf16.msra.mxu0 (!%p355_p2), %v2705_v3  ;;  %v587_v20 = vld [vmem:[%s3391_s10 + $0x8] sm:$0xff] (!%p355_p2)  ;;  %v2833_v21 = vmov (!%p355_p2), 0.0|0.0   ;;  %v2327_v27 = vld [vmem:[%s3384_s3] ss:$0 sm:$0xff] (!%p355_p2)  ;;  %v588_v31 = vld [vmem:[%s3391_s10 + $0x10] sm:$0xff] (!%p355_p2)  ;;  %vm2834_vm0 = vmmov (!%p355_p2), 0  }
   0xc   : > { %547 = vmatprep.subr.bf16.mxu0 (!%p355_p2), %v2706_v4  ;;  %2649 = vmatprep.subr.bf16.mxu1 (!%p355_p2), %v2833_v21  ;;  %v2973_v22 = vpack.c.bf16 (!%p355_p2), %v587_v20, %v586_v19  ;;  %v589_v32 = vld [vmem:[%s3391_s10 + $0x18] sm:$0xff] (!%p355_p2)  ;;  %v2835_v34 = vmov (!%p355_p2), 0.0   ;;  %v2996_v36 = vshrl.u32 (!%p355_p2), %v453_v35, 7  ;;  %v451_v38 = vld [vmem:[%s3387_s6] sm:$0x3] (!%p355_p2)  ;;  %vm596_vm1 = vcmask (!%p355_p2), 261120  }
   0xd   : > { %s3394_s18 = smov (!%p400_p3, %s2318_s18), 1  ;;  %v2987_v33 = vpack.c.bf16 %v589_v32, %v588_v31  ;;  %2511 = vmatprep.mubr.msk.f32.mxu1 %vm2834_vm0, %v2835_v34  ;;  %s2836_s14 = smov 96   ;;  %v3056_v2 = vand.u32 127, %v453_v35  ;;  %vm885_vm3 = vcmask 64512   ;;  %vm904_vm4 = vcmask 1043456  }
   0xe   : > { %s2922_s29 = sshll.u32 %s3394_s18, 3  ;;  %2651 = vmatpush3.bf16.msra.mxu1 %v2973_v22  ;;  %v459_v37 = vsub.s32 1, %v2996_v36  ;;  %s2837_s19 = smov 32   ;;  %v455_v46 = vsub.s32 0, %v2996_v36 }
   0xf   : > { %s403_s13 = scalar_lea.vmem %s3381_s0, %s2922_s29  ;;  %548 = vmatpush1.bf16.msra.mxu0 %v2708_v5  ;;  %2652 = vmatprep.subr.bf16.mxu1 %v2833_v21  ;;  %s407_s18 = scalar_lea.vmem %s3382_s1, %s2922_s29  ;;  %vm594_vm2 = vcmp.le.s32.totalorder %v3056_v2, %v2996_v36  ;;  %v2730_v36 = vld [vmem:[%s3388_s7 + $0x30] sm:$0xff]  }
  0x10   : > { %v2931_v6 = vld [vmem:[%s403_s13] sm:$0xff]  ;;  %549 = vmatprep.subr.bf16.mxu0 %v2709_v8  ;;  %v460_v39 = vrot.slane %v451_v38, %v459_v37  ;;  %v456_v48 = vrot.slane %v451_v38, %v455_v46  ;;  %s411_s22 = scalar_lea.vmem %s3383_s2, %s2922_s29  ;;  %s2838_s23 = smov 64  }
  0x11   : > { %v418_v7 = vmul.f32 %v2931_v6, %v2931_v6  ;;  %v3016_v45 = vld [vmem:[%s407_s18] sm:$0xff]  ;;  %s415_s21 = scalar_lea.vmem %s3392_s11, %s2922_s29 }
  0x12   : > { %2654 = vmatpush3.bf16.msra.mxu1 %v2987_v33  ;;  %v3040_v50 = vld [vmem:[%s411_s22] sm:$0xff] }
  0x13   : > { %419 = vadd.xlane.f32.xlu0 %v418_v7  ;;  %550 = vmatpush1.bf16.msra.mxu0 %v2711_v9 }
  0x14   : > { %551 = vmatprep.subr.bf16.mxu0 %v2712_v10  ;;  %2655 = vmatprep.subr.bf16.mxu1 %v2833_v21 }
  0x17   : > { %552 = vmatpush1.bf16.msra.mxu0 %v2714_v11 }
  0x18   : > { %553 = vmatprep.subr.bf16.mxu0 %v2715_v12 }
  0x1b   : > { %554 = vmatpush1.bf16.msra.mxu0 %v2717_v13 }
  0x1c   : > { %555 = vmatprep.subr.bf16.mxu0 %v2718_v14 }
  0x1f   : > { %556 = vmatpush1.bf16.msra.mxu0 %v2720_v16 }
  0x20   : > { %557 = vmatprep.subr.bf16.mxu0 %v2721_v17 }
  0x23   : > { %558 = vmatpush1.bf16.msra.mxu0 %v2723_v18 }
  0x24   : > { %2559 = vmatprep.subr.bf16.mxu0 %v2835_v34 }
  0xa0   : > { %v420_v23 = vpop.xlane.xlu0 %419 }
  0xa1   : > { %v422_v24 = vmul.f32 0.0078125, %v420_v23 }
  0xa3   : > { %v423_v25 = vadd.f32 1e-05, %v422_v24 }
  0xa5   : > { %2796 = vrsqrt.f32 %v423_v25 }
  0xaf   : > { %v2797_v26 = vpop.eup %2796 }
  0xb0   : > { %v425_v28 = vmul.f32 %v2797_v26, %v2931_v6 }
  0xb2   : > { %v433_v29 = vmul.f32 %v2327_v27, %v425_v28 }
  0xb4   : > { %v434_v30 = vpack.c.bf16 %v433_v29, %v433_v29 }
  0xb6   : > { %576 = vmatmul.mubr.bf16.vlgmr.msra.gmra.mrb[0].mxu0 %v434_v30 }
  0xb7   : > { %2561 = vmatprep.mubr.msk.bf16.mxu0 %vm2834_vm0, %v2835_v34 }
 0x189   : > { %v577_v40 = vpop.f32.mrb[0].mxu0 }
 0x18a   : > { %v579_v41 = vpop.f32.mrb[1].mxu0  ;;  %v3029_v49 = vadd.f32 %v577_v40, %v456_v48 }
 0x18b   : > { %v3002_v42 = vadd.f32 %v579_v41, %v460_v39  ;;  %v581_v43 = vpop.f32.mrb[2].mxu0 }
 0x18c   : > { %v582_v44 = vpop.f32.mrb[3].mxu0  ;;  %v760_v61 = vmul.f32 %v3016_v45, %v3029_v49 }
 0x18d   : > { %679 = vrot.lane.b32.xlu0 %v3002_v42, %s2836_s14  ;;  %2512 = vmatmul.mubr.msk.f32.vlgmr.msra.gmra.mrb[0].mxu1 %vm596_vm1, %v3002_v42  ;;  %v595_v52 = vmul.f32 %v3016_v45, %v3002_v42  ;;  %v3067_v17 = vpack.c.bf16 %v3002_v42, %v3002_v42 }
 0x18e   : > { %2657 = vmatpush3.bf16.msra.mxu1 %v2973_v22  ;;  %2522 = vmatprep.mubr.msk.f32.mxu1 %vm2834_vm0, %v2835_v34 }
 0x18f   : > { %2658 = vmatprep.subr.bf16.mxu1 %v2833_v21 }
 0x191   : > { %675 = vrot.lane.b32.xlu0 %v3016_v45, %s2837_s19 }
 0x192   : > { %2660 = vmatpush3.bf16.msra.mxu1 %v2987_v33 }
 0x193   : > { %2661 = vmatprep.subr.bf16.mxu1 %v2833_v21 }
 0x1ff   : > { %v680_v47 = vpop.permute.xlu0 %679 }
 0x200   : > { %2523 = vmatmul.mubr.msk.f32.vlgmr.msra.gmra.mrb[2].mxu1 %vm596_vm1, %v680_v47 }
 0x201   : > { %2663 = vmatpush3.bf16.msra.mxu1 %v2973_v22  ;;  %2533 = vmatprep.mubr.msk.f32.mxu1 %vm2834_vm0, %v2835_v34 }
 0x202   : > { %2664 = vmatprep.subr.bf16.mxu1 %v2833_v21 }
 0x203   : > { %v676_v37 = vpop.permute.xlu0 %675 }
 0x204   : > { %v953_v38 = vmul.f32 %v676_v37, %v3029_v49 }
 0x205   : > { %2666 = vmatpush3.bf16.msra.mxu1 %v2987_v33 }
 0x206   : > { %2536 = vmatprep.subr.bf16.mxu1 %v2835_v34 }
 0x208   : > { %2534 = vmatmul.mubr.msk.f32.vlgmr.msra.gmra.mrb[4].mxu1 %vm596_vm1, %v3029_v49 }
 0x209   : > { %2538 = vmatprep.mubr.msk.bf16.mxu1 %vm2834_vm0, %v2835_v34 }
 0x260   : > { %v666_v51 = vpop.f32.mrb[0].mxu1 }
 0x261   : > { %v670_v53 = vmul.f32 %v666_v51, %v3040_v50  ;;  %v2513_v54 = vpop.f32.mrb[1].mxu1 }
 0x263   : > { %v671_v55 = vadd.f32 %v670_v53, %v595_v52 }
 0x265   : > { %v672_v56 = vpack.c.bf16 %v671_v55, %v671_v55 }
 0x267   : > { %v841_v57 = vsel %vm596_vm1, %v672_v56, 0 }
 0x268   : > { %2537 = vmatpush3.bf16.xpose.msra.mxu1 %v841_v57  ;;  %2560 = vmatpush3.bf16.xpose.msra.mxu0 %v841_v57  ;;  %v678_v57 = vmul.f32 %v676_v37, %v3002_v42 }
 0x269   : > { %2542 = vmatprep.subr.bf16.mxu1 %v2835_v34  ;;  %2598 = vmatprep.subr.bf16.mxu0 %v2835_v34 }
 0x2d3   : > { %v3048_v58 = vpop.f32.mrb[2].mxu1 }
 0x2d4   : > { %v2524_v59 = vpop.f32.mrb[3].mxu1  ;;  %v753_v54 = vmul.f32 %v3048_v58, %v3040_v50 }
 0x2db   : > { %v830_v60 = vpop.f32.mrb[4].mxu1 }
 0x2dc   : > { %v834_v62 = vmul.f32 %v830_v60, %v3040_v50  ;;  %v2535_v63 = vpop.f32.mrb[5].mxu1 }
 0x2de   : > { %v835_v0 = vadd.f32 %v834_v62, %v760_v61 }
 0x2e0   : > { %v836_v1 = vpack.c.bf16 %v835_v0, %v835_v0 }
 0x2e2   : > { %2539 = vmatmul.mubr.msk.bf16.vlgmr.msra.gmra.mrb[8].mxu1 %vm596_vm1, %v836_v1 }
 0x2e3   : > { %2544 = vmatprep.mubr.msk.bf16.mxu1 %vm2834_vm0, %v2835_v34 }
 0x3b5   : > { %v877_v3 = vpop.f32.mrb[8].mxu1 }
 0x3b6   : > { %v883_v4 = vmul.f32 0.17677669, %v877_v3  ;;  %v2540_v5 = vpop.f32.mrb[9].mxu1 }
 0x3b7   : > { %v880_v7 = vpop.f32.mrb[10].mxu1 }
 0x3b8   : > { %v2541_v8 = vpop.f32.mrb[11].mxu1  ;;  %v884_v9 = vsel %vm594_vm2, %v883_v4, -1e+30  ;;  %v2724_v7 = vld [vmem:[%s3388_s7 + $0x10] sm:$0xff]  }
 0x3b9   : > { %v886_v10 = vsel %vm885_vm3, %v884_v9, -inf }
 0x3ba   : > { %887 = vmax.xlane.f32.xlu1 %v886_v10 }
 0x447   : > { %v888_v11 = vpop.xlane.xlu1 %887 }
 0x448   : > { %v889_v12 = vsub.f32 %v884_v9, %v888_v11  ;;  %v2725_v9 = vld [vmem:[%s3388_s7 + $0x18] sm:$0xff]   ;;  %v2726_v11 = vld [vmem:[%s3388_s7] sm:$0xff]  }
 0x44a   : > { %v890_v13 = vmul.f32 1.442695, %v889_v12 }
 0x44c   : > { %2798 = vpow2.f32 %v890_v13 }
 0x456   : > { %v2799_v14 = vpop.eup %2798 }
 0x457   : > { %v892_v16 = vsel %vm885_vm3, %v2799_v14, 0.0 }
 0x458   : > { %893 = vadd.xlane.f32.xlu1 %v892_v16 }
 0x469   : > { %899 = vrot.lane.b32.xlu1 %v3067_v17, %s2838_s23 }
 0x46d   : > { %954 = vrot.lane.b32.xlu1 %v3029_v49, %s2836_s14 }
 0x4e5   : > { %v894_v18 = vpop.xlane.xlu1 %893 }
 0x4e6   : > { %2800 = vrcp.f32 %v894_v18  ;;  %v2727_v18 = vld [vmem:[%s3388_s7 + $0x8] sm:$0xff]  }
 0x4e9   : > { %v900_v19 = vpop.permute.xlu1 %899 }
 0x4ea   : > { %v906_v20 = vsel %vm904_vm4, %v900_v19, 0 }
 0x4eb   : > { %2543 = vmatpush3.bf16.msra.mxu1 %v906_v20 }
 0x4ec   : > { %2667 = vmatprep.subr.bf16.mxu1 %v2833_v21 }
 0x4ed   : > { %v955_v26 = vpop.permute.xlu1 %954 }
 0x4f0   : > { %v2801_v23 = vpop.eup %2800 }
 0x4f1   : > { %v896_v24 = vmul.f32 %v2801_v23, %v2799_v14 }
 0x4f3   : > { %v897_v25 = vpack.c.bf16 %v896_v24, %v896_v24 }
 0x4f5   : > { %2545 = vmatmul.mubr.msk.bf16.vlgmr.msra.gmra.mrb[12].mxu1 %vm885_vm3, %v897_v25 }
 0x4f6   : > { %2669 = vmatpush3.bf16.msra.mxu1 %v2973_v22  ;;  %2556 = vmatprep.mubr.msk.f32.mxu1 %vm2834_vm0, %v2835_v34 }
 0x4f7   : > { %2670 = vmatprep.subr.bf16.mxu1 %v2833_v21 }
 0x4fa   : > { %2672 = vmatpush3.bf16.msra.mxu1 %v2987_v33 }
 0x4fb   : > { %2565 = vmatprep.subr.bf16.mxu1 %v2835_v34 }
 0x4fd   : > { %2557 = vmatmul.mubr.msk.f32.vlgmr.msra.gmra.mrb[6].mxu1 %vm596_vm1, %v955_v26 }
 0x4fe   : > { %2566 = vmatpush3.bf16.msra.mxu1 %v906_v20  ;;  %2567 = vmatprep.mubr.msk.bf16.mxu1 %vm2834_vm0, %v2835_v34 }
 0x4ff   : > { %2571 = vmatprep.subr.bf16.mxu1 %v2835_v34 }
 0x5c8   : > { %v3086_v27 = vpop.f32.mrb[12].mxu1 }
 0x5c9   : > { %v2546_v28 = vpop.f32.mrb[13].mxu1  ;;  %v948_v19 = vpack.c.bf16 %v3086_v27, %v3086_v27 }
 0x5ca   : > { %v945_v29 = vpop.f32.mrb[14].mxu1 }
 0x5cb   : > { %v2547_v30 = vpop.f32.mrb[15].mxu1 }
 0x5d0   : > { %v1024_v31 = vpop.f32.mrb[6].mxu1 }
 0x5d1   : > { %v1028_v32 = vmul.f32 %v1024_v31, %v3040_v50  ;;  %v2558_v35 = vpop.f32.mrb[7].mxu1 }
 0x5d3   : > { %1030 = vrot.lane.b32.xlu1 %v1028_v32, %s2837_s19 }
 0x645   : > { %v1031_v39 = vpop.permute.xlu1 %1030 }
 0x646   : > { %v1033_v40 = vadd.f32 %v1031_v39, %v953_v38 }
 0x648   : > { %v1034_v41 = vpack.c.bf16 %v1033_v40, %v1033_v40 }
 0x64a   : > { %1036 = vrot.lane.b32.xlu0 %v1034_v41, %s2836_s14 }
 0x6bc   : > { %v1037_v43 = vpop.permute.xlu0 %1036 }
 0x6bd   : > { %2562 = vmatmul.mubr.msk.bf16.vlgmr.msra.gmra.mrb[4].mxu0 %vm596_vm1, %v1037_v43 }
 0x6be   : > { %2600 = vmatprep.mubr.msk.bf16.mxu0 %vm2834_vm0, %v2835_v34 }
 0x790   : > { %v1075_v44 = vpop.f32.mrb[4].mxu0 }
 0x791   : > { %v1081_v46 = vmul.f32 0.17677669, %v1075_v44  ;;  %v2563_v47 = vpop.f32.mrb[5].mxu0 }
 0x792   : > { %v1078_v48 = vpop.f32.mrb[6].mxu0 }
 0x793   : > { %v2564_v51 = vpop.f32.mrb[7].mxu0  ;;  %v1082_v52 = vsel %vm594_vm2, %v1081_v46, -1e+30 }
 0x794   : > { %v1083_v53 = vsel %vm885_vm3, %v1082_v52, -inf }
 0x795   : > { %1084 = vmax.xlane.f32.xlu1 %v1083_v53 }
 0x7a6   : > { %755 = vrot.lane.b32.xlu1 %v753_v54, %s2837_s19 }
 0x7aa   : > { %1253 = vrot.lane.b32.xlu1 %v3016_v45, %s2838_s23 }
 0x822   : > { %v1085_v55 = vpop.xlane.xlu1 %1084 }
 0x823   : > { %v1086_v56 = vsub.f32 %v1082_v52, %v1085_v55 }
 0x825   : > { %v1087_v59 = vmul.f32 1.442695, %v1086_v56 }
 0x826   : > { %v756_v60 = vpop.permute.xlu1 %755 }
 0x827   : > { %2802 = vpow2.f32 %v1087_v59  ;;  %v758_v61 = vadd.f32 %v756_v60, %v678_v57  ;;  %v2728_v60 = vld [vmem:[%s3388_s7 + $0x20] sm:$0xff]  }
 0x829   : > { %v759_v62 = vpack.c.bf16 %v758_v61, %v758_v61 }
 0x82a   : > { %v1254_v58 = vpop.permute.xlu1 %1253 }
 0x82b   : > { %1342 = vrot.lane.b32.xlu1 %v759_v62, %s2836_s14  ;;  %v1256_v38 = vmul.f32 %v1254_v58, %v3029_v49 }
 0x831   : > { %v2803_v63 = vpop.eup %2802 }
 0x832   : > { %v1089_v0 = vsel %vm885_vm3, %v2803_v63, 0.0 }
 0x833   : > { %1090 = vadd.xlane.f32.xlu0 %v1089_v0 }
 0x849   : > { %1257 = vrot.lane.b32.xlu0 %v3029_v49, %s2838_s23 }
 0x89d   : > { %v1343_v1 = vpop.permute.xlu1 %1342 }
 0x89e   : > { %v3110_v3 = vsel %vm596_vm1, %v1343_v1, 0 }
 0x89f   : > { %2599 = vmatpush3.bf16.xpose.msra.mxu0 %v3110_v3 }
 0x8a0   : > { %2610 = vmatprep.subr.bf16.mxu0 %v2835_v34 }
 0x8c0   : > { %v1091_v42 = vpop.xlane.xlu0 %1090 }
 0x8c1   : > { %2804 = vrcp.f32 %v1091_v42 }
 0x8c4   : > { %v1258_v20 = vpop.permute.xlu0 %1257 }
 0x8cb   : > { %v2805_v4 = vpop.eup %2804 }
 0x8cc   : > { %v1093_v5 = vmul.f32 %v2805_v4, %v2803_v63 }
 0x8ce   : > { %v1094_v8 = vpack.c.bf16 %v1093_v5, %v1093_v5 }
 0x8d0   : > { %2568 = vmatmul.mubr.msk.bf16.vlgmr.msra.gmra.mrb[16].mxu1 %vm885_vm3, %v1094_v8 }
 0x8d1   : > { %2572 = vmatpush3.bf16.msra.mxu1 %v2724_v7  ;;  %2575 = vmatprep.mubr.msk.bf16.mxu1 %vm2834_vm0, %v2835_v34 }
 0x8d2   : > { %2573 = vmatprep.subr.bf16.mxu1 %v2835_v34 }
 0x8d5   : > { %2574 = vmatpush3.bf16.msra.mxu1 %v2725_v9 }
 0x8d6   : > { %2579 = vmatprep.subr.bf16.mxu1 %v2835_v34 }
 0x9a3   : > { %v1132_v10 = vpop.f32.mrb[16].mxu1 }
 0x9a4   : > { %v1138_v12 = vpack.c.bf16 %v1132_v10, %v1132_v10  ;;  %v2569_v13 = vpop.f32.mrb[17].mxu1 }
 0x9a5   : > { %v1135_v14 = vpop.f32.mrb[18].mxu1 }
 0x9a6   : > { %v2570_v16 = vpop.f32.mrb[19].mxu1  ;;  %2576 = vmatmul.mubr.msk.bf16.vlgmr.msra.gmra.mrb[20].mxu1 %vm596_vm1, %v1138_v12 }
 0x9a7   : > { %2580 = vmatpush3.bf16.msra.mxu1 %v2726_v11  ;;  %2583 = vmatprep.mubr.msk.bf16.mxu1 %vm2834_vm0, %v2835_v34 }
 0x9a8   : > { %2581 = vmatprep.subr.bf16.mxu1 %v2835_v34 }
 0x9ab   : > { %2582 = vmatpush3.bf16.msra.mxu1 %v2727_v18 }
 0x9ac   : > { %2673 = vmatprep.subr.bf16.mxu1 %v2833_v21 }
 0x9ae   : > { %2584 = vmatmul.mubr.msk.bf16.vlgmr.msra.gmra.mrb[24].mxu1 %vm596_vm1, %v948_v19 }
 0x9af   : > { %2675 = vmatpush3.bf16.msra.mxu1 %v2973_v22  ;;  %2595 = vmatprep.mubr.msk.f32.mxu1 %vm2834_vm0, %v2835_v34 }
 0x9b0   : > { %2676 = vmatprep.subr.bf16.mxu1 %v2833_v21 }
 0x9b3   : > { %2678 = vmatpush3.bf16.msra.mxu1 %v2987_v33 }
 0x9b4   : > { %2604 = vmatprep.subr.bf16.mxu1 %v2835_v34 }
 0x9b6   : > { %2596 = vmatmul.mubr.msk.f32.vlgmr.msra.gmra.mrb[28].mxu1 %vm596_vm1, %v1258_v20 }
 0x9b7   : > { %2606 = vmatprep.mubr.msk.bf16.mxu1 %vm2834_vm0, %v2835_v34 }
 0xa79   : > { %v1192_v23 = vpop.f32.mrb[20].mxu1 }
 0xa7a   : > { %v2577_v24 = vpop.f32.mrb[21].mxu1 }
 0xa7b   : > { %v1195_v25 = vpop.f32.mrb[22].mxu1 }
 0xa7c   : > { %v2578_v26 = vpop.f32.mrb[23].mxu1 }
 0xa81   : > { %v1247_v27 = vpop.f32.mrb[24].mxu1 }
 0xa82   : > { %v3148_v28 = vadd.f32 %v1247_v27, %v1192_v23  ;;  %v2585_v29 = vpop.f32.mrb[25].mxu1 }
 0xa83   : > { %v1250_v30 = vpop.f32.mrb[26].mxu1 }
 0xa84   : > { %v2586_v31 = vpop.f32.mrb[27].mxu1 }
 0xa89   : > { %v1327_v32 = vpop.f32.mrb[28].mxu1 }
 0xa8a   : > { %v1331_v35 = vmul.f32 %v1327_v32, %v3040_v50  ;;  %v2597_v37 = vpop.f32.mrb[29].mxu1 }
 0xa8c   : > { %1333 = vrot.lane.b32.xlu0 %v1331_v35, %s2838_s23 }
 0xafe   : > { %v1334_v39 = vpop.permute.xlu0 %1333 }
 0xaff   : > { %v1336_v40 = vadd.f32 %v1334_v39, %v1256_v38  ;;  %v2731_v39 = vld [vmem:[%s3388_s7 + $0x38] sm:$0xff]  }
 0xb01   : > { %v1337_v41 = vpack.c.bf16 %v1336_v40, %v1336_v40 }
 0xb03   : > { %1339 = vrot.lane.b32.xlu0 %v1337_v41, %s2838_s23 }
 0xb75   : > { %v1340_v43 = vpop.permute.xlu0 %1339 }
 0xb76   : > { %2601 = vmatmul.mubr.msk.bf16.vlgmr.msra.gmra.mrb[8].mxu0 %vm596_vm1, %v1340_v43 }
 0xb77   : > { %2614 = vmatprep.mubr.msk.bf16.mxu0 %vm2834_vm0, %v2835_v34  ;;  %2611 = vmatpush3.bf16.msra.mxu0 %v2728_v60 }
 0xb78   : > { %2612 = vmatprep.subr.bf16.mxu0 %v2835_v34 }
 0xc49   : > { %v1384_v44 = vpop.f32.mrb[8].mxu0 }
 0xc4a   : > { %v1390_v46 = vmul.f32 0.17677669, %v1384_v44  ;;  %v2602_v47 = vpop.f32.mrb[9].mxu0 }
 0xc4b   : > { %v1387_v48 = vpop.f32.mrb[10].mxu0  ;;  %v2732_v47 = vld [vmem:[%s3389_s8] ss:$16 sps:$4 sm:$0xff]  }
 0xc4c   : > { %v2603_v51 = vpop.f32.mrb[11].mxu0  ;;  %v1391_v52 = vsel %vm594_vm2, %v1390_v46, -1e+30  ;;  %v2734_v48 = vld [vmem:[%s3389_s8 + $0x4] ss:$16 sps:$4 sm:$0xff]  }
 0xc4d   : > { %v1392_v53 = vsel %vm885_vm3, %v1391_v52, -inf  ;;  %v2737_v51 = vld [vmem:[%s3389_s8 + $0xc] ss:$16 sps:$4 sm:$0xff]  }
 0xc4e   : > { %1393 = vmax.xlane.f32.xlu1 %v1392_v53  ;;  %v2738_v53 = vld [vmem:[%s3389_s8 + $0x20] ss:$16 sps:$4 sm:$0xff]  }
 0xc5f   : > { %1517 = vrot.lane.b32.xlu1 %v3029_v49, %s2837_s19 }
 0xc63   : > { %1513 = vrot.lane.b32.xlu1 %v3016_v45, %s2836_s14  ;;  %v2729_v45 = vld [vmem:[%s3388_s7 + $0x28] sm:$0xff]  }
 0xc64   : > { %2613 = vmatpush3.bf16.msra.mxu0 %v2729_v45 }
 0xc65   : > { %2629 = vmatprep.subr.bf16.mxu0 %v2835_v34 }
 0xcdb   : > { %v1394_v54 = vpop.xlane.xlu1 %1393 }
 0xcdc   : > { %v1395_v55 = vsub.f32 %v1391_v52, %v1394_v54  ;;  %v2743_v52 = vld [vmem:[%s3389_s8 + $0x2c] ss:$16 sps:$4 sm:$0xff]   ;;  %v2741_v54 = vld [vmem:[%s3389_s8 + $0x28] ss:$16 sps:$4 sm:$0xff]  }
 0xcde   : > { %v1396_v56 = vmul.f32 1.442695, %v1395_v55  ;;  %v2746_v55 = vld [vmem:[%s3389_s8 + $0x44] ss:$16 sps:$4 sm:$0xff]  }
 0xcdf   : > { %v1518_v1 = vpop.permute.xlu1 %1517 }
 0xce0   : > { %2806 = vpow2.f32 %v1396_v56  ;;  %v2749_v56 = vld [vmem:[%s3389_s8 + $0x4c] ss:$16 sps:$4 sm:$0xff]  }
 0xce3   : > { %v1514_v9 = vpop.permute.xlu1 %1513 }
 0xce4   : > { %v1516_v10 = vmul.f32 %v1514_v9, %v3029_v49  ;;  %v2765_v9 = vld [vmem:[%s3389_s8 + $0xa8] ss:$16 sps:$4 sm:$0xff]  }
 0xcea   : > { %v2807_v57 = vpop.eup %2806 }
 0xceb   : > { %v1398_v59 = vsel %vm885_vm3, %v2807_v57, 0.0 }
 0xcec   : > { %1399 = vadd.xlane.f32.xlu0 %v1398_v59  ;;  %v2747_v59 = vld [vmem:[%s3389_s8 + $0x48] ss:$16 sps:$4 sm:$0xff]  }
 0xd02   : > { %1404 = vrot.lane.b32.xlu0 %v3067_v17, %s2837_s19 }
 0xd79   : > { %v1400_v61 = vpop.xlane.xlu0 %1399 }
 0xd7a   : > { %2808 = vrcp.f32 %v1400_v61 }
 0xd7d   : > { %v1405_v62 = vpop.permute.xlu0 %1404 }
 0xd7e   : > { %v1410_v63 = vsel %vm904_vm4, %v1405_v62, 0 }
 0xd7f   : > { %2605 = vmatpush3.bf16.msra.mxu1 %v1410_v63 }
 0xd80   : > { %2679 = vmatprep.subr.bf16.mxu1 %v2833_v21 }
 0xd84   : > { %v2809_v17 = vpop.eup %2808 }
 0xd85   : > { %v1402_v0 = vmul.f32 %v2809_v17, %v2807_v57  ;;  %v2744_v57 = vld [vmem:[%s3389_s8 + $0x40] ss:$16 sps:$4 sm:$0xff]  }
 0xd87   : > { %v1403_v58 = vpack.c.bf16 %v1402_v0, %v1402_v0 }
 0xd89   : > { %2607 = vmatmul.mubr.msk.bf16.vlgmr.msra.gmra.mrb[32].mxu1 %vm885_vm3, %v1403_v58  ;;  %v2752_v58 = vld [vmem:[%s3389_s8 + $0x64] ss:$16 sps:$4 sm:$0xff]  }
 0xd8a   : > { %2681 = vmatpush3.bf16.msra.mxu1 %v2973_v22  ;;  %2626 = vmatprep.mubr.msk.f32.mxu1 %vm2834_vm0, %v2835_v34 }
 0xd8b   : > { %2682 = vmatprep.subr.bf16.mxu1 %v2833_v21 }
 0xd8e   : > { %2684 = vmatpush3.bf16.msra.mxu1 %v2987_v33 }
 0xd8f   : > { %2635 = vmatprep.subr.bf16.mxu1 %v2835_v34 }
 0xd91   : > { %2627 = vmatmul.mubr.msk.f32.vlgmr.msra.gmra.mrb[30].mxu1 %vm596_vm1, %v1518_v1  ;;  %v2755_v1 = vld [vmem:[%s3389_s8 + $0x6c] ss:$16 sps:$4 sm:$0xff]  }
 0xd92   : > { %2636 = vmatpush3.bf16.msra.mxu1 %v1410_v63  ;;  %2637 = vmatprep.mubr.msk.bf16.mxu1 %vm2834_vm0, %v2835_v34 }
 0xd93   : > { %2641 = vmatprep.subr.bf16.mxu1 %v2835_v34 }
 0xe5c   : > { %v1446_v42 = vpop.f32.mrb[32].mxu1 }
 0xe5d   : > { %v1452_v22 = vpack.c.bf16 %v1446_v42, %v1446_v42  ;;  %v2608_v4 = vpop.f32.mrb[33].mxu1  ;;  %v2750_v42 = vld [vmem:[%s3389_s8 + $0x60] ss:$16 sps:$4 sm:$0xff]  }
 0xe5e   : > { %v1449_v5 = vpop.f32.mrb[34].mxu1  ;;  %v2758_v4 = vld [vmem:[%s3389_s8 + $0x84] ss:$16 sps:$4 sm:$0xff]  }
 0xe5f   : > { %v2609_v7 = vpop.f32.mrb[35].mxu1  ;;  %2615 = vmatmul.mubr.msk.bf16.vlgmr.msra.gmra.mrb[12].mxu0 %vm596_vm1, %v1452_v22  ;;  %v2756_v22 = vld [vmem:[%s3389_s8 + $0x80] ss:$16 sps:$4 sm:$0xff]   ;;  %v2759_v5 = vld [vmem:[%s3389_s8 + $0x88] ss:$16 sps:$4 sm:$0xff]  }
 0xe60   : > { %2630 = vmatpush3.bf16.xpose.msra.mxu0 %v3110_v3  ;;  %2631 = vmatprep.mubr.msk.bf16.mxu0 %vm2834_vm0, %v2835_v34  ;;  %v2761_v7 = vld [vmem:[%s3389_s8 + $0x8c] ss:$16 sps:$4 sm:$0xff]  }
 0xe61   : > { %1971 = vmatprep.subr.bf16.mxu0 %v2734_v48 }
 0xe64   : > { %v1587_v21 = vpop.f32.mrb[30].mxu1 }
 0xe65   : > { %v1591_v33 = vmul.f32 %v1587_v21, %v3040_v50  ;;  %v2628_v8 = vpop.f32.mrb[31].mxu1  ;;  %v2764_v21 = vld [vmem:[%s3389_s8 + $0xa4] ss:$16 sps:$4 sm:$0xff]  }
 0xe66   : > { %v2762_v8 = vld [vmem:[%s3389_s8 + $0xa0] ss:$16 sps:$4 sm:$0xff]  }
 0xe67   : > { %1593 = vrot.lane.b32.xlu0 %v1591_v33, %s2836_s14  ;;  %v2767_v33 = vld [vmem:[%s3389_s8 + $0xac] ss:$16 sps:$4 sm:$0xff]  }
 0xed9   : > { %v1594_v11 = vpop.permute.xlu0 %1593 }
 0xeda   : > { %v1596_v12 = vadd.f32 %v1594_v11, %v1516_v10  ;;  %v2770_v10 = vld [vmem:[%s3389_s8 + $0xc4] ss:$16 sps:$4 sm:$0xff]   ;;  %v2773_v11 = vld [vmem:[%s3389_s8 + $0xcc] ss:$16 sps:$4 sm:$0xff]  }
 0xedc   : > { %v1597_v13 = vpack.c.bf16 %v1596_v12, %v1596_v12  ;;  %v2768_v12 = vld [vmem:[%s3389_s8 + $0xc0] ss:$16 sps:$4 sm:$0xff]  }
 0xede   : > { %1599 = vrot.lane.b32.xlu1 %v1597_v13, %s2837_s19  ;;  %v2771_v13 = vld [vmem:[%s3389_s8 + $0xc8] ss:$16 sps:$4 sm:$0xff]  }
 0xf32   : > { %v1506_v14 = vpop.f32.mrb[12].mxu0 }
 0xf33   : > { %v3198_v3 = vadd.f32 %v1506_v14, %v3148_v28  ;;  %v2616_v16 = vpop.f32.mrb[13].mxu0  ;;  %v2776_v14 = vld [vmem:[%s3389_s8 + $0xe4] ss:$16 sps:$4 sm:$0xff]  }
 0xf34   : > { %v1509_v18 = vpop.f32.mrb[14].mxu0  ;;  %v2774_v16 = vld [vmem:[%s3389_s8 + $0xe0] ss:$16 sps:$4 sm:$0xff]  }
 0xf35   : > { %v2617_v19 = vpop.f32.mrb[15].mxu0  ;;  %v2777_v18 = vld [vmem:[%s3389_s8 + $0xe8] ss:$16 sps:$4 sm:$0xff]  }
 0xf50   : > { %v1600_v20 = vpop.permute.xlu1 %1599 }
 0xf51   : > { %2632 = vmatmul.mubr.msk.bf16.vlgmr.msra.gmra.mrb[16].mxu0 %vm596_vm1, %v1600_v20 }
 0xf52   : > { %2003 = vmatprep.mubr.bf16.mxu0 %v2832_v15  ;;  %1972 = vmatpush1.bf16.msra.mxu0 %v2732_v47 }
0x1024   : > { %v1638_v50 = vpop.f32.mrb[16].mxu0 }
0x1025   : > { %v1644_v23 = vmul.f32 0.17677669, %v1638_v50  ;;  %v2633_v49 = vpop.f32.mrb[17].mxu0 }
0x1026   : > { %v1641_v24 = vpop.f32.mrb[18].mxu0  ;;  %v2370_v49 = vld [vmem:[%s3385_s4] ss:$0 sm:$0xff] }
0x1027   : > { %v2634_v25 = vpop.f32.mrb[19].mxu0  ;;  %v1645_v26 = vsel %vm594_vm2, %v1644_v23, -1e+30 }
0x1028   : > { %v1646_v27 = vsel %vm885_vm3, %v1645_v26, -inf }
0x1029   : > { %1647 = vmax.xlane.f32.xlu0 %v1646_v27  ;;  %v2780_v27 = vld [vmem:[%s3390_s9 + $0x40] sm:$0xff]  }
0x10b6   : > { %v1648_v28 = vpop.xlane.xlu0 %1647 }
0x10b7   : > { %v1649_v29 = vsub.f32 %v1645_v26, %v1648_v28  ;;  %v2781_v28 = vld [vmem:[%s3390_s9] sm:$0xff]  }
0x10b9   : > { %v1650_v30 = vmul.f32 1.442695, %v1649_v29  ;;  %v2782_v29 = vld [vmem:[%s3390_s9 + $0x48] sm:$0xff]  }
0x10bb   : > { %2810 = vpow2.f32 %v1650_v30  ;;  %v2783_v30 = vld [vmem:[%s3390_s9 + $0x8] sm:$0xff]  }
0x10c5   : > { %v2811_v31 = vpop.eup %2810 }
0x10c6   : > { %v1652_v32 = vsel %vm885_vm3, %v2811_v31, 0.0 }
0x10c7   : > { %1653 = vadd.xlane.f32.xlu1 %v1652_v32  ;;  %v2785_v32 = vld [vmem:[%s3390_s9 + $0x10] sm:$0xff]  }
0x1154   : > { %v1654_v35 = vpop.xlane.xlu1 %1653 }
0x1155   : > { %2812 = vrcp.f32 %v1654_v35  ;;  %v2786_v35 = vld [vmem:[%s3390_s9 + $0x58] sm:$0xff]  }
0x115f   : > { %v2813_v37 = vpop.eup %2812 }
0x1160   : > { %v1656_v38 = vmul.f32 %v2813_v37, %v2811_v31  ;;  %v2784_v31 = vld [vmem:[%s3390_s9 + $0x50] sm:$0xff]   ;;  %v2787_v37 = vld [vmem:[%s3390_s9 + $0x18] sm:$0xff]  }
0x1162   : > { %v1657_v2 = vpack.c.bf16 %v1656_v38, %v1656_v38  ;;  %v2788_v38 = vld [vmem:[%s3390_s9 + $0x60] sm:$0xff]  }
0x1164   : > { %2638 = vmatmul.mubr.msk.bf16.vlgmr.msra.gmra.mrb[36].mxu1 %vm885_vm3, %v1657_v2  ;;  %v2790_v2 = vld [vmem:[%s3390_s9 + $0x68] sm:$0xff]  }
0x1165   : > { %2642 = vmatpush3.bf16.msra.mxu1 %v2730_v36  ;;  %2645 = vmatprep.mubr.msk.bf16.mxu1 %vm2834_vm0, %v2835_v34  ;;  %v2789_v36 = vld [vmem:[%s3390_s9 + $0x20] sm:$0xff]  }
0x1166   : > { %2643 = vmatprep.subr.bf16.mxu1 %v2835_v34  ;;  %v2735_v34 = vld [vmem:[%s3389_s8 + $0x8] ss:$16 sps:$4 sm:$0xff]  }
0x1169   : > { %2644 = vmatpush3.bf16.msra.mxu1 %v2731_v39  ;;  %v2791_v39 = vld [vmem:[%s3390_s9 + $0x28] sm:$0xff]  }
0x116a   : > { %2012 = vmatprep.subr.bf16.mxu1 %v2737_v51 }
0x1237   : > { %v1695_v40 = vpop.f32.mrb[36].mxu1 }
0x1238   : > { %v1701_v41 = vpack.c.bf16 %v1695_v40, %v1695_v40  ;;  %v2639_v43 = vpop.f32.mrb[37].mxu1  ;;  %v2792_v40 = vld [vmem:[%s3390_s9 + $0x70] sm:$0xff]  }
0x1239   : > { %v1698_v44 = vpop.f32.mrb[38].mxu1  ;;  %v2794_v43 = vld [vmem:[%s3390_s9 + $0x78] sm:$0xff]  }
0x123a   : > { %v2640_v46 = vpop.f32.mrb[39].mxu1  ;;  %2646 = vmatmul.mubr.msk.bf16.vlgmr.msra.gmra.mrb[40].mxu1 %vm596_vm1, %v1701_v41  ;;  %v2793_v41 = vld [vmem:[%s3390_s9 + $0x30] sm:$0xff]   ;;  %v2795_v44 = vld [vmem:[%s3390_s9 + $0x38] sm:$0xff]  }
0x123b   : > { %2044 = vmatprep.mubr.bf16.mxu1 %v2832_v15  ;;  %v2740_v15 = vld [vmem:[%s3389_s8 + $0x24] ss:$16 sps:$4 sm:$0xff]   ;;  %2013 = vmatpush1.bf16.msra.mxu1 %v2735_v34 }
0x123c   : > { %1973 = vmatprep.subr.bf16.mxu0 %v2740_v15  ;;  %2014 = vmatprep.subr.bf16.mxu1 %v2743_v52 }
0x123d   : > { %1974 = vmatpush1.bf16.msra.mxu0 %v2738_v53 }
0x123e   : > { %1975 = vmatprep.subr.bf16.mxu0 %v2746_v55 }
0x123f   : > { %2015 = vmatpush1.bf16.msra.mxu1 %v2741_v54 }
0x1240   : > { %2016 = vmatprep.subr.bf16.mxu1 %v2749_v56 }
0x1241   : > { %1976 = vmatpush1.bf16.msra.mxu0 %v2744_v57 }
0x1242   : > { %1977 = vmatprep.subr.bf16.mxu0 %v2752_v58 }
0x1243   : > { %2017 = vmatpush1.bf16.msra.mxu1 %v2747_v59 }
0x1244   : > { %2018 = vmatprep.subr.bf16.mxu1 %v2755_v1 }
0x1245   : > { %1978 = vmatpush1.bf16.msra.mxu0 %v2750_v42 }
0x1246   : > { %1979 = vmatprep.subr.bf16.mxu0 %v2758_v4 }
0x1249   : > { %1980 = vmatpush1.bf16.msra.mxu0 %v2756_v22 }
0x124a   : > { %1981 = vmatprep.subr.bf16.mxu0 %v2764_v21 }
0x124d   : > { %1982 = vmatpush1.bf16.msra.mxu0 %v2762_v8 }
0x124e   : > { %1983 = vmatprep.subr.bf16.mxu0 %v2770_v10 }
0x1251   : > { %1984 = vmatpush1.bf16.msra.mxu0 %v2768_v12 }
0x1252   : > { %1985 = vmatprep.subr.bf16.mxu0 %v2776_v14 }
0x1255   : > { %1986 = vmatpush1.bf16.msra.mxu0 %v2774_v16 }
0x1256   : > { %2481 = vmatprep.subr.bf16.mxu0 %v2780_v27 }
0x130d   : > { %v1755_v60 = vpop.f32.mrb[40].mxu1 }
0x130e   : > { %v1761_v45 = vadd.f32 %v1755_v60, %v3198_v3  ;;  %v2647_v61 = vpop.f32.mrb[41].mxu1  ;;  %v2779_v3 = vld [vmem:[%s3389_s8 + $0xec] ss:$16 sps:$4 sm:$0xff]  }
0x130f   : > { %v1758_v62 = vpop.f32.mrb[42].mxu1 }
0x1310   : > { %v3257_v63 = vadd.f32 %v1761_v45, %v2931_v6  ;;  %v2648_v17 = vpop.f32.mrb[43].mxu1  ;;  %v2753_v6 = vld [vmem:[%s3389_s8 + $0x68] ss:$16 sps:$4 sm:$0xff]  }
0x1311   : > { %2019 = vmatpush1.bf16.msra.mxu1 %v2753_v6 }
0x1312   : > { %v1763_v0 = vmul.f32 %v3257_v63, %v3257_v63  ;;  %2020 = vmatprep.subr.bf16.mxu1 %v2761_v7 }
0x1314   : > { %1764 = vadd.xlane.f32.xlu0 %v1763_v0 }
0x1315   : > { %2021 = vmatpush1.bf16.msra.mxu1 %v2759_v5 }
0x1316   : > { %2022 = vmatprep.subr.bf16.mxu1 %v2767_v33 }
0x1319   : > { %2023 = vmatpush1.bf16.msra.mxu1 %v2765_v9 }
0x131a   : > { %2024 = vmatprep.subr.bf16.mxu1 %v2773_v11 }
0x131d   : > { %2025 = vmatpush1.bf16.msra.mxu1 %v2771_v13 }
0x131e   : > { %2026 = vmatprep.subr.bf16.mxu1 %v2779_v3 }
0x1321   : > { %2027 = vmatpush1.bf16.msra.mxu1 %v2777_v18 }
0x13a1   : > { %v1765_v19 = vpop.xlane.xlu0 %1764 }
0x13a2   : > { %v1766_v20 = vmul.f32 0.0078125, %v1765_v19 }
0x13a4   : > { %v1767_v50 = vadd.f32 1e-05, %v1766_v20 }
0x13a6   : > { %2814 = vrsqrt.f32 %v1767_v50 }
0x13b0   : > { %v2815_v23 = vpop.eup %2814 }
0x13b1   : > { %v1769_v24 = vmul.f32 %v2815_v23, %v3257_v63 }
0x13b3   : > { %v1777_v25 = vmul.f32 %v2370_v49, %v1769_v24 }
0x13b5   : > { %v1778_v26 = vpack.c.bf16 %v1777_v25, %v1777_v25 }
0x13b7   : > { %2004 = vmatmul.mubr.bf16.vlgmr.msra.gmra.mrb[20].mxu0 %v1778_v26  ;;  %2045 = vmatmul.mubr.bf16.vlgmr.msra.gmra.mrb[44].mxu1 %v1778_v26 }
0x13b8   : > { %2482 = vmatpush3.bf16.msra.mxu0 %v2781_v28 }
0x13b9   : > { %2483 = vmatprep.subr.bf16.mxu0 %v2782_v29 }
0x13bc   : > { %2484 = vmatpush3.bf16.msra.mxu0 %v2783_v30 }
0x13bd   : > { %2485 = vmatprep.subr.bf16.mxu0 %v2784_v31 }
0x13c0   : > { %2486 = vmatpush3.bf16.msra.mxu0 %v2785_v32 }
0x13c1   : > { %2487 = vmatprep.subr.bf16.mxu0 %v2786_v35 }
0x13c4   : > { %2488 = vmatpush3.bf16.msra.mxu0 %v2787_v37 }
0x13c5   : > { %2489 = vmatprep.subr.bf16.mxu0 %v2788_v38 }
0x13c8   : > { %2490 = vmatpush3.bf16.msra.mxu0 %v2789_v36 }
0x13c9   : > { %2491 = vmatprep.subr.bf16.mxu0 %v2790_v2 }
0x13cc   : > { %2492 = vmatpush3.bf16.msra.mxu0 %v2791_v39 }
0x13cd   : > { %2493 = vmatprep.subr.bf16.mxu0 %v2792_v40 }
0x13d0   : > { %2494 = vmatpush3.bf16.msra.mxu0 %v2793_v41 }
0x13d1   : > { %2495 = vmatprep.subr.bf16.mxu0 %v2794_v43 }
0x13d4   : > { %2496 = vmatpush3.bf16.msra.mxu0 %v2795_v44 }
0x148a   : > { %v2005_v46 = vpop.f32.mrb[20].mxu0  ;;  %v2046_v47 = vpop.f32.mrb[44].mxu1 }
0x148b   : > { %v2403_v48 = vmul.f32 -1.442695, %v2005_v46  ;;  %v2007_v34 = vpop.f32.mrb[21].mxu0  ;;  %v2048_v51 = vpop.f32.mrb[45].mxu1 }
0x148c   : > { %v2404_v15 = vmul.f32 -1.442695, %v2007_v34  ;;  %v2009_v52 = vpop.f32.mrb[22].mxu0  ;;  %v2050_v53 = vpop.f32.mrb[46].mxu1 }
0x148d   : > { %2816 = vpow2.f32 %v2403_v48  ;;  %v2010_v54 = vpop.f32.mrb[23].mxu0  ;;  %v2051_v55 = vpop.f32.mrb[47].mxu1 }
0x148e   : > { %2818 = vpow2.f32 %v2404_v15 }
0x1497   : > { %v2817_v56 = vpop.eup %2816 }
0x1498   : > { %v2819_v57 = vpop.eup %2818  ;;  %v2059_v59 = vadd.f32 1.0, %v2817_v56 }
0x1499   : > { %v2060_v60 = vadd.f32 1.0, %v2819_v57 }
0x149a   : > { %2820 = vrcp.f32 %v2059_v59 }
0x149b   : > { %2822 = vrcp.f32 %v2060_v60 }
0x14a4   : > { %v2821_v45 = vpop.eup %2820 }
0x14a5   : > { %v2823_v61 = vpop.eup %2822  ;;  %v2065_v62 = vmul.f32 %v2821_v45, %v2005_v46 }
0x14a6   : > { %v2066_v17 = vmul.f32 %v2823_v61, %v2007_v34 }
0x14a7   : > { %v2067_v0 = vmul.f32 %v2065_v62, %v2046_v47 }
0x14a8   : > { %v2068_v58 = vmul.f32 %v2066_v17, %v2048_v51 }
0x14a9   : > { %v2069_v42 = vpack.c.bf16 %v2067_v0, %v2067_v0 }
0x14aa   : > { %v2070_v1 = vpack.c.bf16 %v2068_v58, %v2068_v58 }
0x14ac   : > { %2231 = vmatprep.mubr.bf16.mxu0 %v2070_v1 }
0x14ad   : > { %2232 = vmatmul.mubr.bf16.vlgmr.msra.gmra.mrb[24].mxu0 %v2069_v42 }
0x1580   : > { %v2497_v6 = vpop.f32.mrb[24].mxu0 }
0x1581   : > { %v2498_v22 = vpop.f32.mrb[25].mxu0 }
0x1582   : > { %v2499_v4 = vadd.f32 %v2498_v22, %v2497_v6  ;;  %v2500_v5 = vpop.f32.mrb[26].mxu0 }
0x1583   : > { %v2501_v7 = vpop.f32.mrb[27].mxu0 }
0x1584   : > { %v2239_v21 = vadd.f32 %v2499_v4, %v3257_v63 }
0x1586   : > { %2240 = vst [vmem:[%s415_s21] sm:$0xff] %v2239_v21 }
0x1587 PF: > { %s21_s17 = sadd.s32 1, %s2830_s17  }
0x1588   : > { %p18_p4 = scmp.ge.s32.totalorder %s21_s17, 4  }
0x158a   :  { %20 = sbr.rel (!%p18_p4) target bundleno = 1 (0x1), region = 100 }

</bundles_post_ra>
